<compile_context>
chip_gen: v5e
topology: v5e:2x2
jax: 0.10.0
libtpu: 0.0.40
codegen_flags: <defaults>
</compile_context>

<pallas_src>
import math
import functools

import jax
import jax.numpy as jnp
from jax.experimental import pallas as pl
from jax.experimental.pallas import tpu as pltpu


# ----------------------------------------------------------------------------
# Tiled linear projection kernel:  y = x @ W^T + b
#   x: (M, Cin), W: (Cout, Cin) — contracted on dim 1 of both (no W.T copy).
# ----------------------------------------------------------------------------
def _linear_kernel(x_ref, w_ref, b_ref, o_ref, acc_ref):
    @pl.when(pl.program_id(2) == 0)
    def _init():
        acc_ref[...] = jnp.zeros_like(acc_ref)

    acc_ref[...] += jax.lax.dot_general(
        x_ref[...], w_ref[...],
        dimension_numbers=(((1,), (1,)), ((), ())),   # x[., k] * w[., k]
        preferred_element_type=jnp.float32,
    )

    @pl.when(pl.program_id(2) == pl.num_programs(2) - 1)
    def _finalize():
        o_ref[...] = (acc_ref[...] + b_ref[...].astype(jnp.float32)).astype(o_ref.dtype)


def _tile(dim, target):
    """Use the target tile if it divides the dim exactly, else fall back to the
    full dim (keeps blocks exact; targets are multiples of 128 for the MXU)."""
    return target if dim % target == 0 else dim


def linear(x2d, w, b, *, tm=256, tn=256, tk=512):
    M, Cin = x2d.shape
    Cout, Cin2 = w.shape
    assert Cin == Cin2
    tm = _tile(M, tm)
    tn = _tile(Cout, tn)
    tk = _tile(Cin, tk)
    grid = (M // tm, Cout // tn, Cin // tk)
    b2 = b.reshape(1, Cout)
    return pl.pallas_call(
        _linear_kernel,
        out_shape=jax.ShapeDtypeStruct((M, Cout), x2d.dtype),
        grid=grid,
        in_specs=[
            pl.BlockSpec((tm, tk), lambda i, j, k: (i, k)),
            pl.BlockSpec((tn, tk), lambda i, j, k: (j, k)),
            pl.BlockSpec((1, tn), lambda i, j, k: (0, j)),
        ],
        out_specs=pl.BlockSpec((tm, tn), lambda i, j, k: (i, j)),
        scratch_shapes=[pltpu.VMEM((tm, tn), jnp.float32)],
        compiler_params=pltpu.CompilerParams(
            dimension_semantics=("parallel", "parallel", "arbitrary")),
    )(x2d, w, b2)


# ----------------------------------------------------------------------------
# Attention kernel — one grid step per batch, all heads at once.
#   q/k/v/o refs: (1, T, H, Dh)   (natural projection layout, no transposes)
#   cos/sin refs: (T, 1, half)    (half-width tables; sin already the raw table,
#                                  signs are handled by the fused RoPE formulas)
# ----------------------------------------------------------------------------
def _mha_rotary_kernel(q_ref, k_ref, v_ref, cos_ref, sin_ref, o_ref,
                       *, rot, num_heads, scale):
    half = rot // 2

    q = q_ref[0]            # (T, H, Dh), input dtype (no forced f32 up-cast)
    k = k_ref[0]
    v = v_ref[0]
    c = cos_ref[...]        # (T, 1, half) — broadcasts over heads
    s = sin_ref[...]

    # RoPE on the first `rot` channels of each head.  Because the original
    # cos/sin tables are cat(freqs, freqs), both halves are identical and
    #   out[:half] = x1*c - x2*s,   out[half:rot] = x2*c + x1*s
    # which is pure FMA work plus a single lane concat (no negate+concat
    # rotate_half, no second concat).
    q1, q2, q_pass = q[..., :half], q[..., half:rot], q[..., rot:]
    k1, k2, k_pass = k[..., :half], k[..., half:rot], k[..., rot:]

    qf = jnp.concatenate([q1 * c - q2 * s, q2 * c + q1 * s, q_pass], axis=-1)
    kf = jnp.concatenate([k1 * c - k2 * s, k2 * c + k1 * s, k_pass], axis=-1)

    # Fold 1/sqrt(Dh) into q: T*Dh multiplies instead of a T*T pass on att.
    qf = qf * jnp.asarray(scale, qf.dtype)

    # Per-head attention (static unrolled loop; H is small and static).
    for h in range(num_heads):
        qh = qf[:, h, :]                       # (T, Dh)
        kh = kf[:, h, :]
        vh = v[:, h, :]

        # q @ k^T without an explicit transpose / relayout of k.
        att = jax.lax.dot_general(
            qh, kh, dimension_numbers=(((1,), (1,)), ((), ())),
            preferred_element_type=jnp.float32)            # (T, T) f32

        att = att - jnp.max(att, axis=-1, keepdims=True)
        p = jnp.exp(att)
        denom = jnp.sum(p, axis=-1, keepdims=True)
        p = p * pl.reciprocal(denom, approx=True)          # EUP reciprocal

        out = jnp.dot(p.astype(vh.dtype), vh,
                      preferred_element_type=jnp.float32)  # (T, Dh)
        o_ref[0, :, h, :] = out.astype(o_ref.dtype)


def mha_attention(q, k, v, cos_h, sin_h):
    B, T, H, Dh = q.shape
    half = cos_h.shape[-1]
    rot = 2 * half
    scale = 1.0 / math.sqrt(Dh)
    kernel = functools.partial(_mha_rotary_kernel,
                               rot=rot, num_heads=H, scale=scale)
    return pl.pallas_call(
        kernel,
        out_shape=jax.ShapeDtypeStruct((B, T, H, Dh), q.dtype),
        grid=(B,),
        in_specs=[
            pl.BlockSpec((1, T, H, Dh), lambda b: (b, 0, 0, 0)),
            pl.BlockSpec((1, T, H, Dh), lambda b: (b, 0, 0, 0)),
            pl.BlockSpec((1, T, H, Dh), lambda b: (b, 0, 0, 0)),
            pl.BlockSpec((T, 1, half), lambda b: (0, 0, 0)),
            pl.BlockSpec((T, 1, half), lambda b: (0, 0, 0)),
        ],
        out_specs=pl.BlockSpec((1, T, H, Dh), lambda b: (b, 0, 0, 0)),
        compiler_params=pltpu.CompilerParams(
            dimension_semantics=("parallel",)),     # shards batches over TCs
    )(q, k, v, cos_h, sin_h)


# ----------------------------------------------------------------------------
# RoPE table (matches RotaryEmbedding.forward)
# ----------------------------------------------------------------------------
def rope_cos_sin(seq_len, rotary_ndims, dtype=jnp.float32, base=10000.0):
    inv_freq = 1.0 / (base ** (jnp.arange(0, rotary_ndims, 2, dtype=jnp.float32)
                               / rotary_ndims))
    t = jnp.arange(seq_len, dtype=jnp.float32)
    freqs = jnp.einsum("i,j->ij", t, inv_freq)          # (T, rot/2)
    emb = jnp.concatenate([freqs, freqs], axis=-1)      # (T, rot)
    return jnp.cos(emb).astype(dtype), jnp.sin(emb).astype(dtype)


# ----------------------------------------------------------------------------
# Full forward pass (no HBM transposes: q/k/v/o stay in (B, T, H, Dh) layout)
# ----------------------------------------------------------------------------
def mha_rotary_forward(x, params, num_heads):
    B, T, C = x.shape
    Dh = C // num_heads
    rot = int(Dh * 0.5)
    half = rot // 2

    x2 = x.reshape(B * T, C)
    q = linear(x2, params["wq"], params["bq"]).reshape(B, T, num_heads, Dh)
    k = linear(x2, params["wk"], params["bk"]).reshape(B, T, num_heads, Dh)
    v = linear(x2, params["wv"], params["bv"]).reshape(B, T, num_heads, Dh)

    cos, sin = rope_cos_sin(T, rot, x.dtype)            # halves are identical
    cos_h = cos[:, :half].reshape(T, 1, half)
    sin_h = sin[:, :half].reshape(T, 1, half)

    o = mha_attention(q, k, v, cos_h, sin_h)            # (B, T, H, Dh)

    o2 = o.reshape(B * T, C)                            # free reshape, no transpose
    y = linear(o2, params["wo"], params["bo"]).reshape(B, T, C)
    return y


# ----------------------------------------------------------------------------
# Pure-JAX reference (mirrors the PyTorch module for correctness check)
# ----------------------------------------------------------------------------
def reference_forward(x, params, num_heads):
    B, T, C = x.shape
    Dh = C // num_heads
    rot = Dh // 2

    def lin(z, w, b):
        return z @ w.T + b

    q = lin(x, params["wq"], params["bq"]).reshape(B, T, num_heads, Dh).transpose(0, 2, 1, 3)
    k = lin(x, params["wk"], params["bk"]).reshape(B, T, num_heads, Dh).transpose(0, 2, 1, 3)
    v = lin(x, params["wv"], params["bv"]).reshape(B, T, num_heads, Dh).transpose(0, 2, 1, 3)

    cos, sin = rope_cos_sin(T, rot, x.dtype)

    def rotate_half(z):
        z1, z2 = z[..., : z.shape[-1] // 2], z[..., z.shape[-1] // 2:]
        return jnp.concatenate([-z2, z1], axis=-1)

    q_r, q_p = q[..., :rot], q[..., rot:]
    k_r, k_p = k[..., :rot], k[..., rot:]
    q_r = q_r * cos + rotate_half(q_r) * sin
    k_r = k_r * cos + rotate_half(k_r) * sin
    q = jnp.concatenate([q_r, q_p], axis=-1)
    k = jnp.concatenate([k_r, k_p], axis=-1)

    att = (q @ jnp.swapaxes(k, -2, -1)) * (1.0 / math.sqrt(Dh))
    att = jax.nn.softmax(att, axis=-1)
    o = (att @ v).transpose(0, 2, 1, 3).reshape(B, T, C)
    return lin(o, params["wo"], params["bo"])


if __name__ == "__main__":
    B, T, C, H = 2, 8, 32, 4   # head_size Dh = 8, rotary_ndims = 4

    key = jax.random.PRNGKey(0)
    ks = jax.random.split(key, 9)
    scale = 1.0 / math.sqrt(C)
    params = {
        "wq": jax.random.normal(ks[0], (C, C), jnp.float32) * scale,
        "bq": jax.random.normal(ks[1], (C,), jnp.float32) * 0.1,
        "wk": jax.random.normal(ks[2], (C, C), jnp.float32) * scale,
        "bk": jax.random.normal(ks[3], (C,), jnp.float32) * 0.1,
        "wv": jax.random.normal(ks[4], (C, C), jnp.float32) * scale,
        "bv": jax.random.normal(ks[5], (C,), jnp.float32) * 0.1,
        "wo": jax.random.normal(ks[6], (C, C), jnp.float32) * scale,
        "bo": jax.random.normal(ks[7], (C,), jnp.float32) * 0.1,
    }
    x = jax.random.normal(ks[8], (B, T, C), jnp.float32)

    fwd = jax.jit(functools.partial(mha_rotary_forward, num_heads=H))
    y = jax.block_until_ready(fwd(x, params))

    y_ref = reference_forward(x, params, H)
    assert y.shape == (B, T, C)
    # Tolerance is a bit looser than f32 epsilon because the softmax denominator
    # uses the EUP's approximate reciprocal (pl.reciprocal(approx=True)).
    assert jnp.allclose(y, y_ref, atol=5e-3, rtol=5e-3), "mismatch vs reference"

    print("KERNEL_OK")
</pallas_src>

<mosaic_0001>
module attributes {stable_mosaic.version = 11 : i64} {
  func.func @_linear_kernel(%arg0: i32, %arg1: i32, %arg2: i32, %arg3: memref<16x32xf32, #tpu.memory_space<vmem>>, %arg4: memref<32x32xf32, #tpu.memory_space<vmem>>, %arg5: memref<1x32xf32, #tpu.memory_space<vmem>>, %arg6: memref<16x32xf32, #tpu.memory_space<vmem>>, %arg7: memref<16x32xf32, #tpu.memory_space<vmem>>) attributes {dimension_semantics = [#tpu.dimension_semantics<parallel>, #tpu.dimension_semantics<parallel>, #tpu.dimension_semantics<arbitrary>], iteration_bounds = array<i64: 1, 1, 1>, scalar_prefetch = 0 : i64, scratch_operands = 1 : i64, tpu.core_type = #tpu.core_type<tc>, window_params = [{transform_indices = @transform_0, window_bounds = array<i64: 16, 32>}, {transform_indices = @transform_1, window_bounds = array<i64: 32, 32>}, {transform_indices = @transform_2, window_bounds = array<i64: 1, 32>}, {transform_indices = @transform_3, window_bounds = array<i64: 16, 32>}]} {
    %c0_i32 = arith.constant 0 : i32
    %0 = arith.cmpi eq, %arg2, %c0_i32 : i32
    %1 = arith.extui %0 : i1 to i32
    %c0_i32_0 = arith.constant 0 : i32
    %2 = arith.cmpi ne, %1, %c0_i32_0 : i32
    scf.if %2 {
      %cst_10 = arith.constant 0.000000e+00 : f32
      %12 = vector.broadcast %cst_10 : f32 to vector<16x32xf32>
      %c0_11 = arith.constant 0 : index
      %c0_12 = arith.constant 0 : index
      %13 = vector.load %arg7[%c0_11, %c0_12] : memref<16x32xf32, #tpu.memory_space<vmem>>, vector<16x32xf32>
      tpu.vector_store %arg7[%c0_11, %c0_12], %12 {strides = array<i32>} : memref<16x32xf32, #tpu.memory_space<vmem>>, vector<16x32xf32>,
    } else {
    }
    %c0 = arith.constant 0 : index
    %c0_1 = arith.constant 0 : index
    %3 = vector.load %arg7[%c0, %c0_1] : memref<16x32xf32, #tpu.memory_space<vmem>>, vector<16x32xf32>
    %c0_2 = arith.constant 0 : index
    %c0_3 = arith.constant 0 : index
    %4 = vector.load %arg3[%c0_2, %c0_3] : memref<16x32xf32, #tpu.memory_space<vmem>>, vector<16x32xf32>
    %c0_4 = arith.constant 0 : index
    %c0_5 = arith.constant 0 : index
    %5 = vector.load %arg4[%c0_4, %c0_5] : memref<32x32xf32, #tpu.memory_space<vmem>>, vector<32x32xf32>
    %cst = arith.constant dense<0.000000e+00> : vector<16x32xf32>
    %6 = tpu.matmul %4, %5, %cst {dimension_numbers = #tpu.dot_dimension_numbers<[1], [1], [0], [0], [0, 0, 1, 0], [], []>} : vector<16x32xf32>, vector<32x32xf32>, vector<16x32xf32> -> vector<16x32xf32>
    %7 = arith.addf %3, %6 : vector<16x32xf32>
    %c0_6 = arith.constant 0 : index
    %c0_7 = arith.constant 0 : index
    %8 = vector.load %arg7[%c0_6, %c0_7] : memref<16x32xf32, #tpu.memory_space<vmem>>, vector<16x32xf32>
    tpu.vector_store %arg7[%c0_6, %c0_7], %7 {strides = array<i32>} : memref<16x32xf32, #tpu.memory_space<vmem>>, vector<16x32xf32>,
    %c0_i32_8 = arith.constant 0 : i32
    %9 = arith.cmpi eq, %arg2, %c0_i32_8 : i32
    %10 = arith.extui %9 : i1 to i32
    %c0_i32_9 = arith.constant 0 : i32
    %11 = arith.cmpi ne, %10, %c0_i32_9 : i32
    scf.if %11 {
      %c0_10 = arith.constant 0 : index
      %c0_11 = arith.constant 0 : index
      %12 = vector.load %arg7[%c0_10, %c0_11] : memref<16x32xf32, #tpu.memory_space<vmem>>, vector<16x32xf32>
      %c0_12 = arith.constant 0 : index
      %c0_13 = arith.constant 0 : index
      %13 = vector.load %arg5[%c0_12, %c0_13] : memref<1x32xf32, #tpu.memory_space<vmem>>, vector<1x32xf32>
      %14 = vector.broadcast %13 : vector<1x32xf32> to vector<16x32xf32>
      %15 = arith.addf %12, %14 : vector<16x32xf32>
      %c0_14 = arith.constant 0 : index
      %c0_15 = arith.constant 0 : index
      %16 = vector.load %arg6[%c0_14, %c0_15] : memref<16x32xf32, #tpu.memory_space<vmem>>, vector<16x32xf32>
      tpu.vector_store %arg6[%c0_14, %c0_15], %15 {strides = array<i32>} : memref<16x32xf32, #tpu.memory_space<vmem>>, vector<16x32xf32>,
    } else {
    }
    return
  }
  func.func @transform_0(%arg0: i32, %arg1: i32, %arg2: i32) -> (i32, i32) {
    %c0_i32 = arith.constant 0 : i32
    return %arg0, %arg2 : i32, i32
  }
  func.func @transform_1(%arg0: i32, %arg1: i32, %arg2: i32) -> (i32, i32) {
    %c0_i32 = arith.constant 0 : i32
    return %arg1, %arg2 : i32, i32
  }
  func.func @transform_2(%arg0: i32, %arg1: i32, %arg2: i32) -> (i32, i32) {
    %c0_i32 = arith.constant 0 : i32
    %c0_i32_0 = arith.constant 0 : i32
    return %c0_i32, %arg1 : i32, i32
  }
  func.func @transform_3(%arg0: i32, %arg1: i32, %arg2: i32) -> (i32, i32) {
    %c0_i32 = arith.constant 0 : i32
    return %arg0, %arg1 : i32, i32
  }
}

module attributes {stable_mosaic.version = 11 : i64} {
  func.func @_linear_kernel(%arg0: i32, %arg1: i32, %arg2: i32, %arg3: memref<16x32xf32, #tpu.memory_space<vmem>>, %arg4: memref<32x32xf32, #tpu.memory_space<vmem>>, %arg5: memref<1x32xf32, #tpu.memory_space<vmem>>, %arg6: memref<16x32xf32, #tpu.memory_space<vmem>>, %arg7: memref<16x32xf32, #tpu.memory_space<vmem>>) attributes {dimension_semantics = [#tpu.dimension_semantics<parallel>, #tpu.dimension_semantics<parallel>, #tpu.dimension_semantics<arbitrary>], iteration_bounds = array<i64: 1, 1, 1>, scalar_prefetch = 0 : i64, scratch_operands = 1 : i64, tpu.core_type = #tpu.core_type<tc>, window_params = [{transform_indices = @transform_0, window_bounds = array<i64: 16, 32>}, {transform_indices = @transform_1, window_bounds = array<i64: 32, 32>}, {transform_indices = @transform_2, window_bounds = array<i64: 1, 32>}, {transform_indices = @transform_3, window_bounds = array<i64: 16, 32>}]} {
    %c0_i32 = arith.constant 0 : i32
    %0 = arith.cmpi eq, %arg2, %c0_i32 : i32
    %1 = arith.extui %0 : i1 to i32
    %c0_i32_0 = arith.constant 0 : i32
    %2 = arith.cmpi ne, %1, %c0_i32_0 : i32
    scf.if %2 {
      %cst_10 = arith.constant 0.000000e+00 : f32
      %12 = vector.broadcast %cst_10 : f32 to vector<16x32xf32>
      %c0_11 = arith.constant 0 : index
      %c0_12 = arith.constant 0 : index
      %13 = vector.load %arg7[%c0_11, %c0_12] : memref<16x32xf32, #tpu.memory_space<vmem>>, vector<16x32xf32>
      tpu.vector_store %arg7[%c0_11, %c0_12], %12 {strides = array<i32>} : memref<16x32xf32, #tpu.memory_space<vmem>>, vector<16x32xf32>,
    } else {
    }
    %c0 = arith.constant 0 : index
    %c0_1 = arith.constant 0 : index
    %3 = vector.load %arg7[%c0, %c0_1] : memref<16x32xf32, #tpu.memory_space<vmem>>, vector<16x32xf32>
    %c0_2 = arith.constant 0 : index
    %c0_3 = arith.constant 0 : index
    %4 = vector.load %arg3[%c0_2, %c0_3] : memref<16x32xf32, #tpu.memory_space<vmem>>, vector<16x32xf32>
    %c0_4 = arith.constant 0 : index
    %c0_5 = arith.constant 0 : index
    %5 = vector.load %arg4[%c0_4, %c0_5] : memref<32x32xf32, #tpu.memory_space<vmem>>, vector<32x32xf32>
    %cst = arith.constant dense<0.000000e+00> : vector<16x32xf32>
    %6 = tpu.matmul %4, %5, %cst {dimension_numbers = #tpu.dot_dimension_numbers<[1], [1], [0], [0], [0, 0, 1, 0], [], []>} : vector<16x32xf32>, vector<32x32xf32>, vector<16x32xf32> -> vector<16x32xf32>
    %7 = arith.addf %3, %6 : vector<16x32xf32>
    %c0_6 = arith.constant 0 : index
    %c0_7 = arith.constant 0 : index
    %8 = vector.load %arg7[%c0_6, %c0_7] : memref<16x32xf32, #tpu.memory_space<vmem>>, vector<16x32xf32>
    tpu.vector_store %arg7[%c0_6, %c0_7], %7 {strides = array<i32>} : memref<16x32xf32, #tpu.memory_space<vmem>>, vector<16x32xf32>,
    %c0_i32_8 = arith.constant 0 : i32
    %9 = arith.cmpi eq, %arg2, %c0_i32_8 : i32
    %10 = arith.extui %9 : i1 to i32
    %c0_i32_9 = arith.constant 0 : i32
    %11 = arith.cmpi ne, %10, %c0_i32_9 : i32
    scf.if %11 {
      %c0_10 = arith.constant 0 : index
      %c0_11 = arith.constant 0 : index
      %12 = vector.load %arg7[%c0_10, %c0_11] : memref<16x32xf32, #tpu.memory_space<vmem>>, vector<16x32xf32>
      %c0_12 = arith.constant 0 : index
      %c0_13 = arith.constant 0 : index
      %13 = vector.load %arg5[%c0_12, %c0_13] : memref<1x32xf32, #tpu.memory_space<vmem>>, vector<1x32xf32>
      %14 = vector.broadcast %13 : vector<1x32xf32> to vector<16x32xf32>
      %15 = arith.addf %12, %14 : vector<16x32xf32>
      %c0_14 = arith.constant 0 : index
      %c0_15 = arith.constant 0 : index
      %16 = vector.load %arg6[%c0_14, %c0_15] : memref<16x32xf32, #tpu.memory_space<vmem>>, vector<16x32xf32>
      tpu.vector_store %arg6[%c0_14, %c0_15], %15 {strides = array<i32>} : memref<16x32xf32, #tpu.memory_space<vmem>>, vector<16x32xf32>,
    } else {
    }
    return
  }
  func.func @transform_0(%arg0: i32, %arg1: i32, %arg2: i32) -> (i32, i32) {
    %c0_i32 = arith.constant 0 : i32
    return %arg0, %arg2 : i32, i32
  }
  func.func @transform_1(%arg0: i32, %arg1: i32, %arg2: i32) -> (i32, i32) {
    %c0_i32 = arith.constant 0 : i32
    return %arg1, %arg2 : i32, i32
  }
  func.func @transform_2(%arg0: i32, %arg1: i32, %arg2: i32) -> (i32, i32) {
    %c0_i32 = arith.constant 0 : i32
    %c0_i32_0 = arith.constant 0 : i32
    return %c0_i32, %arg1 : i32, i32
  }
  func.func @transform_3(%arg0: i32, %arg1: i32, %arg2: i32) -> (i32, i32) {
    %c0_i32 = arith.constant 0 : i32
    return %arg0, %arg1 : i32, i32
  }
}

module attributes {stable_mosaic.version = 11 : i64} {
  func.func @_mha_rotary_kernel(%arg0: i32, %arg1: memref<1x8x4x8xf32, #tpu.memory_space<vmem>>, %arg2: memref<1x8x4x8xf32, #tpu.memory_space<vmem>>, %arg3: memref<1x8x4x8xf32, #tpu.memory_space<vmem>>, %arg4: memref<8x1x2xf32, #tpu.memory_space<vmem>>, %arg5: memref<8x1x2xf32, #tpu.memory_space<vmem>>, %arg6: memref<1x8x4x8xf32, #tpu.memory_space<vmem>>) attributes {dimension_semantics = [#tpu.dimension_semantics<parallel>], iteration_bounds = array<i64: 2>, scalar_prefetch = 0 : i64, scratch_operands = 0 : i64, tpu.core_type = #tpu.core_type<tc>, window_params = [{transform_indices = @transform_0, window_bounds = array<i64: 1, 8, 4, 8>}, {transform_indices = @transform_1, window_bounds = array<i64: 1, 8, 4, 8>}, {transform_indices = @transform_2, window_bounds = array<i64: 1, 8, 4, 8>}, {pipeline_mode = #tpu.pipeline_mode<synchronous>, transform_indices = @transform_3, window_bounds = array<i64: 8, 1, 2>}, {pipeline_mode = #tpu.pipeline_mode<synchronous>, transform_indices = @transform_4, window_bounds = array<i64: 8, 1, 2>}, {transform_indices = @transform_5, window_bounds = array<i64: 1, 8, 4, 8>}]} {
    %c0 = arith.constant 0 : index
    %c0_0 = arith.constant 0 : index
    %c0_1 = arith.constant 0 : index
    %c0_2 = arith.constant 0 : index
    %0 = vector.load %arg1[%c0, %c0_0, %c0_1, %c0_2] : memref<1x8x4x8xf32, #tpu.memory_space<vmem>>, vector<1x8x4x8xf32>
    %1 = vector.shape_cast %0 : vector<1x8x4x8xf32> to vector<8x4x8xf32>
    %c0_3 = arith.constant 0 : index
    %c0_4 = arith.constant 0 : index
    %c0_5 = arith.constant 0 : index
    %c0_6 = arith.constant 0 : index
    %2 = vector.load %arg2[%c0_3, %c0_4, %c0_5, %c0_6] : memref<1x8x4x8xf32, #tpu.memory_space<vmem>>, vector<1x8x4x8xf32>
    %3 = vector.shape_cast %2 : vector<1x8x4x8xf32> to vector<8x4x8xf32>
    %c0_7 = arith.constant 0 : index
    %c0_8 = arith.constant 0 : index
    %c0_9 = arith.constant 0 : index
    %c0_10 = arith.constant 0 : index
    %4 = vector.load %arg3[%c0_7, %c0_8, %c0_9, %c0_10] : memref<1x8x4x8xf32, #tpu.memory_space<vmem>>, vector<1x8x4x8xf32>
    %5 = vector.shape_cast %4 : vector<1x8x4x8xf32> to vector<8x4x8xf32>
    %c0_11 = arith.constant 0 : index
    %c0_12 = arith.constant 0 : index
    %c0_13 = arith.constant 0 : index
    %6 = vector.load %arg4[%c0_11, %c0_12, %c0_13] : memref<8x1x2xf32, #tpu.memory_space<vmem>>, vector<8x1x2xf32>
    %c0_14 = arith.constant 0 : index
    %c0_15 = arith.constant 0 : index
    %c0_16 = arith.constant 0 : index
    %7 = vector.load %arg5[%c0_14, %c0_15, %c0_16] : memref<8x1x2xf32, #tpu.memory_space<vmem>>, vector<8x1x2xf32>
    %8 = vector.extract_strided_slice %1 {offsets = [0, 0, 0], sizes = [8, 4, 2], strides = [1, 1, 1]} : vector<8x4x8xf32> to vector<8x4x2xf32>
    %9 = vector.extract_strided_slice %1 {offsets = [0, 0, 2], sizes = [8, 4, 2], strides = [1, 1, 1]} : vector<8x4x8xf32> to vector<8x4x2xf32>
    %10 = vector.extract_strided_slice %1 {offsets = [0, 0, 4], sizes = [8, 4, 4], strides = [1, 1, 1]} : vector<8x4x8xf32> to vector<8x4x4xf32>
    %11 = vector.extract_strided_slice %3 {offsets = [0, 0, 0], sizes = [8, 4, 2], strides = [1, 1, 1]} : vector<8x4x8xf32> to vector<8x4x2xf32>
    %12 = vector.extract_strided_slice %3 {offsets = [0, 0, 2], sizes = [8, 4, 2], strides = [1, 1, 1]} : vector<8x4x8xf32> to vector<8x4x2xf32>
    %13 = vector.extract_strided_slice %3 {offsets = [0, 0, 4], sizes = [8, 4, 4], strides = [1, 1, 1]} : vector<8x4x8xf32> to vector<8x4x4xf32>
    %14 = vector.broadcast %6 : vector<8x1x2xf32> to vector<8x4x2xf32>
    %15 = arith.mulf %8, %14 : vector<8x4x2xf32>
    %16 = vector.broadcast %7 : vector<8x1x2xf32> to vector<8x4x2xf32>
    %17 = arith.mulf %9, %16 : vector<8x4x2xf32>
    %18 = arith.subf %15, %17 : vector<8x4x2xf32>
    %19 = vector.broadcast %6 : vector<8x1x2xf32> to vector<8x4x2xf32>
    %20 = arith.mulf %9, %19 : vector<8x4x2xf32>
    %21 = vector.broadcast %7 : vector<8x1x2xf32> to vector<8x4x2xf32>
    %22 = arith.mulf %8, %21 : vector<8x4x2xf32>
    %23 = arith.addf %20, %22 : vector<8x4x2xf32>
    %24 = tpu.concatenate %18, %23, %10 in 2 : vector<8x4x2xf32>, vector<8x4x2xf32>, vector<8x4x4xf32> -> vector<8x4x8xf32>
    %25 = vector.broadcast %6 : vector<8x1x2xf32> to vector<8x4x2xf32>
    %26 = arith.mulf %11, %25 : vector<8x4x2xf32>
    %27 = vector.broadcast %7 : vector<8x1x2xf32> to vector<8x4x2xf32>
    %28 = arith.mulf %12, %27 : vector<8x4x2xf32>
    %29 = arith.subf %26, %28 : vector<8x4x2xf32>
    %30 = vector.broadcast %6 : vector<8x1x2xf32> to vector<8x4x2xf32>
    %31 = arith.mulf %12, %30 : vector<8x4x2xf32>
    %32 = vector.broadcast %7 : vector<8x1x2xf32> to vector<8x4x2xf32>
    %33 = arith.mulf %11, %32 : vector<8x4x2xf32>
    %34 = arith.addf %31, %33 : vector<8x4x2xf32>
    %35 = tpu.concatenate %29, %34, %13 in 2 : vector<8x4x2xf32>, vector<8x4x2xf32>, vector<8x4x4xf32> -> vector<8x4x8xf32>
    %cst = arith.constant 0.353553385 : f32
    %36 = vector.broadcast %cst : f32 to vector<8x4x8xf32>
    %37 = arith.mulf %24, %36 : vector<8x4x8xf32>
    %38 = vector.extract_strided_slice %37 {offsets = [0, 0, 0], sizes = [8, 1, 8], strides = [1, 1, 1]} : vector<8x4x8xf32> to vector<8x1x8xf32>
    %39 = vector.shape_cast %38 : vector<8x1x8xf32> to vector<8x8xf32>
    %40 = vector.extract_strided_slice %35 {offsets = [0, 0, 0], sizes = [8, 1, 8], strides = [1, 1, 1]} : vector<8x4x8xf32> to vector<8x1x8xf32>
    %41 = vector.shape_cast %40 : vector<8x1x8xf32> to vector<8x8xf32>
    %42 = vector.extract_strided_slice %5 {offsets = [0, 0, 0], sizes = [8, 1, 8], strides = [1, 1, 1]} : vector<8x4x8xf32> to vector<8x1x8xf32>
    %43 = vector.shape_cast %42 : vector<8x1x8xf32> to vector<8x8xf32>
    %cst_17 = arith.constant dense<0.000000e+00> : vector<8x8xf32>
    %44 = tpu.matmul %39, %41, %cst_17 {dimension_numbers = #tpu.dot_dimension_numbers<[1], [1], [0], [0], [0, 0, 1, 0], [], []>} : vector<8x8xf32>, vector<8x8xf32>, vector<8x8xf32> -> vector<8x8xf32>
    %cst_18 = arith.constant dense<0xFF800000> : vector<8xf32>
    %45 = vector.multi_reduction <maximumf>, %44, %cst_18 [1] : vector<8x8xf32> to vector<8xf32>
    %46 = vector.shape_cast %45 : vector<8xf32> to vector<8x1xf32>
    %47 = vector.broadcast %46 : vector<8x1xf32> to vector<8x8xf32>
    %48 = arith.subf %44, %47 : vector<8x8xf32>
    %49 = math.exp %48 : vector<8x8xf32>
    %cst_19 = arith.constant dense<0.000000e+00> : vector<8xf32>
    %50 = vector.multi_reduction <add>, %49, %cst_19 [1] : vector<8x8xf32> to vector<8xf32>
    %51 = vector.shape_cast %50 : vector<8xf32> to vector<8x1xf32>
    %52 = tpu.reciprocal %51 {approx = true} : vector<8x1xf32> -> vector<8x1xf32>
    %53 = vector.broadcast %52 : vector<8x1xf32> to vector<8x8xf32>
    %54 = arith.mulf %49, %53 : vector<8x8xf32>
    %cst_20 = arith.constant dense<0.000000e+00> : vector<8x8xf32>
    %55 = tpu.matmul %54, %43, %cst_20 {dimension_numbers = #tpu.dot_dimension_numbers<[1], [0], [0], [1], [0, 0, 1, 1], [], []>} : vector<8x8xf32>, vector<8x8xf32>, vector<8x8xf32> -> vector<8x8xf32>
    %c0_21 = arith.constant 0 : index
    %c0_22 = arith.constant 0 : index
    %c0_23 = arith.constant 0 : index
    %c0_24 = arith.constant 0 : index
    %56 = vector.load %arg6[%c0_21, %c0_22, %c0_23, %c0_24] : memref<1x8x4x8xf32, #tpu.memory_space<vmem>>, vector<1x8x1x8xf32>
    %57 = vector.shape_cast %56 : vector<1x8x1x8xf32> to vector<8x8xf32>
    %58 = vector.shape_cast %55 : vector<8x8xf32> to vector<1x8x1x8xf32>
    tpu.vector_store %arg6[%c0_21, %c0_22, %c0_23, %c0_24], %58 {strides = array<i32>} : memref<1x8x4x8xf32, #tpu.memory_space<vmem>>, vector<1x8x1x8xf32>,
    %59 = vector.extract_strided_slice %37 {offsets = [0, 1, 0], sizes = [8, 1, 8], strides = [1, 1, 1]} : vector<8x4x8xf32> to vector<8x1x8xf32>
    %60 = vector.shape_cast %59 : vector<8x1x8xf32> to vector<8x8xf32>
    %61 = vector.extract_strided_slice %35 {offsets = [0, 1, 0], sizes = [8, 1, 8], strides = [1, 1, 1]} : vector<8x4x8xf32> to vector<8x1x8xf32>
    %62 = vector.shape_cast %61 : vector<8x1x8xf32> to vector<8x8xf32>
    %63 = vector.extract_strided_slice %5 {offsets = [0, 1, 0], sizes = [8, 1, 8], strides = [1, 1, 1]} : vector<8x4x8xf32> to vector<8x1x8xf32>
    %64 = vector.shape_cast %63 : vector<8x1x8xf32> to vector<8x8xf32>
    %cst_25 = arith.constant dense<0.000000e+00> : vector<8x8xf32>
    %65 = tpu.matmul %60, %62, %cst_25 {dimension_numbers = #tpu.dot_dimension_numbers<[1], [1], [0], [0], [0, 0, 1, 0], [], []>} : vector<8x8xf32>, vector<8x8xf32>, vector<8x8xf32> -> vector<8x8xf32>
    %cst_26 = arith.constant dense<0xFF800000> : vector<8xf32>
    %66 = vector.multi_reduction <maximumf>, %65, %cst_26 [1] : vector<8x8xf32> to vector<8xf32>
    %67 = vector.shape_cast %66 : vector<8xf32> to vector<8x1xf32>
    %68 = vector.broadcast %67 : vector<8x1xf32> to vector<8x8xf32>
    %69 = arith.subf %65, %68 : vector<8x8xf32>
    %70 = math.exp %69 : vector<8x8xf32>
    %cst_27 = arith.constant dense<0.000000e+00> : vector<8xf32>
    %71 = vector.multi_reduction <add>, %70, %cst_27 [1] : vector<8x8xf32> to vector<8xf32>
    %72 = vector.shape_cast %71 : vector<8xf32> to vector<8x1xf32>
    %73 = tpu.reciprocal %72 {approx = true} : vector<8x1xf32> -> vector<8x1xf32>
    %74 = vector.broadcast %73 : vector<8x1xf32> to vector<8x8xf32>
    %75 = arith.mulf %70, %74 : vector<8x8xf32>
    %cst_28 = arith.constant dense<0.000000e+00> : vector<8x8xf32>
    %76 = tpu.matmul %75, %64, %cst_28 {dimension_numbers = #tpu.dot_dimension_numbers<[1], [0], [0], [1], [0, 0, 1, 1], [], []>} : vector<8x8xf32>, vector<8x8xf32>, vector<8x8xf32> -> vector<8x8xf32>
    %c0_29 = arith.constant 0 : index
    %c0_30 = arith.constant 0 : index
    %c1 = arith.constant 1 : index
    %c0_31 = arith.constant 0 : index
    %77 = vector.load %arg6[%c0_29, %c0_30, %c1, %c0_31] : memref<1x8x4x8xf32, #tpu.memory_space<vmem>>, vector<1x8x1x8xf32>
    %78 = vector.shape_cast %77 : vector<1x8x1x8xf32> to vector<8x8xf32>
    %79 = vector.shape_cast %76 : vector<8x8xf32> to vector<1x8x1x8xf32>
    tpu.vector_store %arg6[%c0_29, %c0_30, %c1, %c0_31], %79 {strides = array<i32>} : memref<1x8x4x8xf32, #tpu.memory_space<vmem>>, vector<1x8x1x8xf32>,
    %80 = vector.extract_strided_slice %37 {offsets = [0, 2, 0], sizes = [8, 1, 8], strides = [1, 1, 1]} : vector<8x4x8xf32> to vector<8x1x8xf32>
    %81 = vector.shape_cast %80 : vector<8x1x8xf32> to vector<8x8xf32>
    %82 = vector.extract_strided_slice %35 {offsets = [0, 2, 0], sizes = [8, 1, 8], strides = [1, 1, 1]} : vector<8x4x8xf32> to vector<8x1x8xf32>
    %83 = vector.shape_cast %82 : vector<8x1x8xf32> to vector<8x8xf32>
    %84 = vector.extract_strided_slice %5 {offsets = [0, 2, 0], sizes = [8, 1, 8], strides = [1, 1, 1]} : vector<8x4x8xf32> to vector<8x1x8xf32>
    %85 = vector.shape_cast %84 : vector<8x1x8xf32> to vector<8x8xf32>
    %cst_32 = arith.constant dense<0.000000e+00> : vector<8x8xf32>
    %86 = tpu.matmul %81, %83, %cst_32 {dimension_numbers = #tpu.dot_dimension_numbers<[1], [1], [0], [0], [0, 0, 1, 0], [], []>} : vector<8x8xf32>, vector<8x8xf32>, vector<8x8xf32> -> vector<8x8xf32>
    %cst_33 = arith.constant dense<0xFF800000> : vector<8xf32>
    %87 = vector.multi_reduction <maximumf>, %86, %cst_33 [1] : vector<8x8xf32> to vector<8xf32>
    %88 = vector.shape_cast %87 : vector<8xf32> to vector<8x1xf32>
    %89 = vector.broadcast %88 : vector<8x1xf32> to vector<8x8xf32>
    %90 = arith.subf %86, %89 : vector<8x8xf32>
    %91 = math.exp %90 : vector<8x8xf32>
    %cst_34 = arith.constant dense<0.000000e+00> : vector<8xf32>
    %92 = vector.multi_reduction <add>, %91, %cst_34 [1] : vector<8x8xf32> to vector<8xf32>
    %93 = vector.shape_cast %92 : vector<8xf32> to vector<8x1xf32>
    %94 = tpu.reciprocal %93 {approx = true} : vector<8x1xf32> -> vector<8x1xf32>
    %95 = vector.broadcast %94 : vector<8x1xf32> to vector<8x8xf32>
    %96 = arith.mulf %91, %95 : vector<8x8xf32>
    %cst_35 = arith.constant dense<0.000000e+00> : vector<8x8xf32>
    %97 = tpu.matmul %96, %85, %cst_35 {dimension_numbers = #tpu.dot_dimension_numbers<[1], [0], [0], [1], [0, 0, 1, 1], [], []>} : vector<8x8xf32>, vector<8x8xf32>, vector<8x8xf32> -> vector<8x8xf32>
    %c0_36 = arith.constant 0 : index
    %c0_37 = arith.constant 0 : index
    %c2 = arith.constant 2 : index
    %c0_38 = arith.constant 0 : index
    %98 = vector.load %arg6[%c0_36, %c0_37, %c2, %c0_38] : memref<1x8x4x8xf32, #tpu.memory_space<vmem>>, vector<1x8x1x8xf32>
    %99 = vector.shape_cast %98 : vector<1x8x1x8xf32> to vector<8x8xf32>
    %100 = vector.shape_cast %97 : vector<8x8xf32> to vector<1x8x1x8xf32>
    tpu.vector_store %arg6[%c0_36, %c0_37, %c2, %c0_38], %100 {strides = array<i32>} : memref<1x8x4x8xf32, #tpu.memory_space<vmem>>, vector<1x8x1x8xf32>,
    %101 = vector.extract_strided_slice %37 {offsets = [0, 3, 0], sizes = [8, 1, 8], strides = [1, 1, 1]} : vector<8x4x8xf32> to vector<8x1x8xf32>
    %102 = vector.shape_cast %101 : vector<8x1x8xf32> to vector<8x8xf32>
    %103 = vector.extract_strided_slice %35 {offsets = [0, 3, 0], sizes = [8, 1, 8], strides = [1, 1, 1]} : vector<8x4x8xf32> to vector<8x1x8xf32>
    %104 = vector.shape_cast %103 : vector<8x1x8xf32> to vector<8x8xf32>
    %105 = vector.extract_strided_slice %5 {offsets = [0, 3, 0], sizes = [8, 1, 8], strides = [1, 1, 1]} : vector<8x4x8xf32> to vector<8x1x8xf32>
    %106 = vector.shape_cast %105 : vector<8x1x8xf32> to vector<8x8xf32>
    %cst_39 = arith.constant dense<0.000000e+00> : vector<8x8xf32>
    %107 = tpu.matmul %102, %104, %cst_39 {dimension_numbers = #tpu.dot_dimension_numbers<[1], [1], [0], [0], [0, 0, 1, 0], [], []>} : vector<8x8xf32>, vector<8x8xf32>, vector<8x8xf32> -> vector<8x8xf32>
    %cst_40 = arith.constant dense<0xFF800000> : vector<8xf32>
    %108 = vector.multi_reduction <maximumf>, %107, %cst_40 [1] : vector<8x8xf32> to vector<8xf32>
    %109 = vector.shape_cast %108 : vector<8xf32> to vector<8x1xf32>
    %110 = vector.broadcast %109 : vector<8x1xf32> to vector<8x8xf32>
    %111 = arith.subf %107, %110 : vector<8x8xf32>
    %112 = math.exp %111 : vector<8x8xf32>
    %cst_41 = arith.constant dense<0.000000e+00> : vector<8xf32>
    %113 = vector.multi_reduction <add>, %112, %cst_41 [1] : vector<8x8xf32> to vector<8xf32>
    %114 = vector.shape_cast %113 : vector<8xf32> to vector<8x1xf32>
    %115 = tpu.reciprocal %114 {approx = true} : vector<8x1xf32> -> vector<8x1xf32>
    %116 = vector.broadcast %115 : vector<8x1xf32> to vector<8x8xf32>
    %117 = arith.mulf %112, %116 : vector<8x8xf32>
    %cst_42 = arith.constant dense<0.000000e+00> : vector<8x8xf32>
    %118 = tpu.matmul %117, %106, %cst_42 {dimension_numbers = #tpu.dot_dimension_numbers<[1], [0], [0], [1], [0, 0, 1, 1], [], []>} : vector<8x8xf32>, vector<8x8xf32>, vector<8x8xf32> -> vector<8x8xf32>
    %c0_43 = arith.constant 0 : index
    %c0_44 = arith.constant 0 : index
    %c3 = arith.constant 3 : index
    %c0_45 = arith.constant 0 : index
    %119 = vector.load %arg6[%c0_43, %c0_44, %c3, %c0_45] : memref<1x8x4x8xf32, #tpu.memory_space<vmem>>, vector<1x8x1x8xf32>
    %120 = vector.shape_cast %119 : vector<1x8x1x8xf32> to vector<8x8xf32>
    %121 = vector.shape_cast %118 : vector<8x8xf32> to vector<1x8x1x8xf32>
    tpu.vector_store %arg6[%c0_43, %c0_44, %c3, %c0_45], %121 {strides = array<i32>} : memref<1x8x4x8xf32, #tpu.memory_space<vmem>>, vector<1x8x1x8xf32>,
    return
  }
  func.func @transform_0(%arg0: i32) -> (i32, i32, i32, i32) {
    %c0_i32 = arith.constant 0 : i32
    %c0_i32_0 = arith.constant 0 : i32
    %c0_i32_1 = arith.constant 0 : i32
    %c0_i32_2 = arith.constant 0 : i32
    return %arg0, %c0_i32, %c0_i32_0, %c0_i32_1 : i32, i32, i32, i32
  }
  func.func @transform_1(%arg0: i32) -> (i32, i32, i32, i32) {
    %c0_i32 = arith.constant 0 : i32
    %c0_i32_0 = arith.constant 0 : i32
    %c0_i32_1 = arith.constant 0 : i32
    %c0_i32_2 = arith.constant 0 : i32
    return %arg0, %c0_i32, %c0_i32_0, %c0_i32_1 : i32, i32, i32, i32
  }
  func.func @transform_2(%arg0: i32) -> (i32, i32, i32, i32) {
    %c0_i32 = arith.constant 0 : i32
    %c0_i32_0 = arith.constant 0 : i32
    %c0_i32_1 = arith.constant 0 : i32
    %c0_i32_2 = arith.constant 0 : i32
    return %arg0, %c0_i32, %c0_i32_0, %c0_i32_1 : i32, i32, i32, i32
  }
  func.func @transform_3(%arg0: i32) -> (i32, i32, i32) {
    %c0_i32 = arith.constant 0 : i32
    %c0_i32_0 = arith.constant 0 : i32
    %c0_i32_1 = arith.constant 0 : i32
    %c0_i32_2 = arith.constant 0 : i32
    return %c0_i32, %c0_i32_0, %c0_i32_1 : i32, i32, i32
  }
  func.func @transform_4(%arg0: i32) -> (i32, i32, i32) {
    %c0_i32 = arith.constant 0 : i32
    %c0_i32_0 = arith.constant 0 : i32
    %c0_i32_1 = arith.constant 0 : i32
    %c0_i32_2 = arith.constant 0 : i32
    return %c0_i32, %c0_i32_0, %c0_i32_1 : i32, i32, i32
  }
  func.func @transform_5(%arg0: i32) -> (i32, i32, i32, i32) {
    %c0_i32 = arith.constant 0 : i32
    %c0_i32_0 = arith.constant 0 : i32
    %c0_i32_1 = arith.constant 0 : i32
    %c0_i32_2 = arith.constant 0 : i32
    return %arg0, %c0_i32, %c0_i32_0, %c0_i32_1 : i32, i32, i32, i32
  }
}

module attributes {stable_mosaic.version = 11 : i64} {
  func.func @_linear_kernel(%arg0: i32, %arg1: i32, %arg2: i32, %arg3: memref<16x32xf32, #tpu.memory_space<vmem>>, %arg4: memref<32x32xf32, #tpu.memory_space<vmem>>, %arg5: memref<1x32xf32, #tpu.memory_space<vmem>>, %arg6: memref<16x32xf32, #tpu.memory_space<vmem>>, %arg7: memref<16x32xf32, #tpu.memory_space<vmem>>) attributes {dimension_semantics = [#tpu.dimension_semantics<parallel>, #tpu.dimension_semantics<parallel>, #tpu.dimension_semantics<arbitrary>], iteration_bounds = array<i64: 1, 1, 1>, scalar_prefetch = 0 : i64, scratch_operands = 1 : i64, tpu.core_type = #tpu.core_type<tc>, window_params = [{transform_indices = @transform_0, window_bounds = array<i64: 16, 32>}, {transform_indices = @transform_1, window_bounds = array<i64: 32, 32>}, {transform_indices = @transform_2, window_bounds = array<i64: 1, 32>}, {transform_indices = @transform_3, window_bounds = array<i64: 16, 32>}]} {
    %c0_i32 = arith.constant 0 : i32
    %0 = arith.cmpi eq, %arg2, %c0_i32 : i32
    %1 = arith.extui %0 : i1 to i32
    %c0_i32_0 = arith.constant 0 : i32
    %2 = arith.cmpi ne, %1, %c0_i32_0 : i32
    scf.if %2 {
      %cst_10 = arith.constant 0.000000e+00 : f32
      %12 = vector.broadcast %cst_10 : f32 to vector<16x32xf32>
      %c0_11 = arith.constant 0 : index
      %c0_12 = arith.constant 0 : index
      %13 = vector.load %arg7[%c0_11, %c0_12] : memref<16x32xf32, #tpu.memory_space<vmem>>, vector<16x32xf32>
      tpu.vector_store %arg7[%c0_11, %c0_12], %12 {strides = array<i32>} : memref<16x32xf32, #tpu.memory_space<vmem>>, vector<16x32xf32>,
    } else {
    }
    %c0 = arith.constant 0 : index
    %c0_1 = arith.constant 0 : index
    %3 = vector.load %arg7[%c0, %c0_1] : memref<16x32xf32, #tpu.memory_space<vmem>>, vector<16x32xf32>
    %c0_2 = arith.constant 0 : index
    %c0_3 = arith.constant 0 : index
    %4 = vector.load %arg3[%c0_2, %c0_3] : memref<16x32xf32, #tpu.memory_space<vmem>>, vector<16x32xf32>
    %c0_4 = arith.constant 0 : index
    %c0_5 = arith.constant 0 : index
    %5 = vector.load %arg4[%c0_4, %c0_5] : memref<32x32xf32, #tpu.memory_space<vmem>>, vector<32x32xf32>
    %cst = arith.constant dense<0.000000e+00> : vector<16x32xf32>
    %6 = tpu.matmul %4, %5, %cst {dimension_numbers = #tpu.dot_dimension_numbers<[1], [1], [0], [0], [0, 0, 1, 0], [], []>} : vector<16x32xf32>, vector<32x32xf32>, vector<16x32xf32> -> vector<16x32xf32>
    %7 = arith.addf %3, %6 : vector<16x32xf32>
    %c0_6 = arith.constant 0 : index
    %c0_7 = arith.constant 0 : index
    %8 = vector.load %arg7[%c0_6, %c0_7] : memref<16x32xf32, #tpu.memory_space<vmem>>, vector<16x32xf32>
    tpu.vector_store %arg7[%c0_6, %c0_7], %7 {strides = array<i32>} : memref<16x32xf32, #tpu.memory_space<vmem>>, vector<16x32xf32>,
    %c0_i32_8 = arith.constant 0 : i32
    %9 = arith.cmpi eq, %arg2, %c0_i32_8 : i32
    %10 = arith.extui %9 : i1 to i32
    %c0_i32_9 = arith.constant 0 : i32
    %11 = arith.cmpi ne, %10, %c0_i32_9 : i32
    scf.if %11 {
      %c0_10 = arith.constant 0 : index
      %c0_11 = arith.constant 0 : index
      %12 = vector.load %arg7[%c0_10, %c0_11] : memref<16x32xf32, #tpu.memory_space<vmem>>, vector<16x32xf32>
      %c0_12 = arith.constant 0 : index
      %c0_13 = arith.constant 0 : index
      %13 = vector.load %arg5[%c0_12, %c0_13] : memref<1x32xf32, #tpu.memory_space<vmem>>, vector<1x32xf32>
      %14 = vector.broadcast %13 : vector<1x32xf32> to vector<16x32xf32>
      %15 = arith.addf %12, %14 : vector<16x32xf32>
      %c0_14 = arith.constant 0 : index
      %c0_15 = arith.constant 0 : index
      %16 = vector.load %arg6[%c0_14, %c0_15] : memref<16x32xf32, #tpu.memory_space<vmem>>, vector<16x32xf32>
      tpu.vector_store %arg6[%c0_14, %c0_15], %15 {strides = array<i32>} : memref<16x32xf32, #tpu.memory_space<vmem>>, vector<16x32xf32>,
    } else {
    }
    return
  }
  func.func @transform_0(%arg0: i32, %arg1: i32, %arg2: i32) -> (i32, i32) {
    %c0_i32 = arith.constant 0 : i32
    return %arg0, %arg2 : i32, i32
  }
  func.func @transform_1(%arg0: i32, %arg1: i32, %arg2: i32) -> (i32, i32) {
    %c0_i32 = arith.constant 0 : i32
    return %arg1, %arg2 : i32, i32
  }
  func.func @transform_2(%arg0: i32, %arg1: i32, %arg2: i32) -> (i32, i32) {
    %c0_i32 = arith.constant 0 : i32
    %c0_i32_0 = arith.constant 0 : i32
    return %c0_i32, %arg1 : i32, i32
  }
  func.func @transform_3(%arg0: i32, %arg1: i32, %arg2: i32) -> (i32, i32) {
    %c0_i32 = arith.constant 0 : i32
    return %arg0, %arg1 : i32, i32
  }
}

</mosaic_0001>

<bundles_post_ra>
// kernel: mha_rotary_forward.6
= control target key start
LH: loop header
LB: loop body
LE: loop exit
PB: predicated region body
PF: predicated region fallthrough
CT: control target
= control target key end

     0   :  { %8 = vsyncpa [#allocation4], 0  ;;  %s150_s15 = smov [#allocation3]   ;;  %s151_s17 = smov 128   ;;  %s208_s0 = inlined_call_operand.vmem [shape: f32[16,32], index: 0, kind: input, shape index: {}]   ;;  %s209_s1 = inlined_call_operand.hbm [shape: f32[32,32], index: 1, kind: input, shape index: {}]   ;;  %s210_s2 = inlined_call_operand.vmem [shape: f32[1,32], index: 2, kind: input, shape index: {}]   ;;  %s211_s3 = inlined_call_operand.vmem [shape: f32[16,32], index: 3, kind: output, shape index: {}]  }
   0x1   :  { %s15_s14 = sshll.u32 %s209_s1, 4  ;;  %s17_s16 = sshll.u32 %s150_s15, 4  ;;  %s16_s14 = int_to_ptr.hbm [resolvable:$true] %s15_s14  ;;  %s18_s16 = int_to_ptr.vmem [resolvable:$true] %s17_s16 }
   0x2   :  { %s152_s18 = smov 8  }
   0x3   :  { %23 = dma.hbm_to_vmem [thread:$0]  %s16_s14, 512, %s18_s16, [#allocation4], %s151_s17, %s151_s17, %s152_s18  }
   0x4   :  { %148 = dma.done.wait [#allocation4], 512  }
   0x5   :  { %149 = vsyncadd [#allocation4], 4294966784  ;;  %vm34_vm0 = vcmask 261120   ;;  %v153_v0 = vmov 0.0   ;;  %v44_v1 = vld [vmem:[#allocation3 + $0x18] sm:$0xff]  ;;  %v43_v2 = vld [vmem:[#allocation3 + $0x10] sm:$0xff] }
   0x6   :  { %35 = vst.msk [vmem:[#allocation2] sm:$0xff] %vm34_vm0, %v153_v0  ;;  %109 = vmatpush.xpose.msk.msra.mxu0 %vm34_vm0, %v44_v1  ;;  %115 = vmatpush.xpose.msk.msra.mxu1 %vm34_vm0, %v44_v1  ;;  %v42_v3 = vld [vmem:[#allocation3 + $0x8] sm:$0xff]  ;;  %v41_v4 = vld [vmem:[#allocation3] sm:$0xff]  ;;  %v39_v5 = vld [vmem:[%s208_s0] sm:$0xff] }
   0x7   :  { %36 = vst.msk [vmem:[#allocation2 + $0x8] sm:$0xff] %vm34_vm0, %v153_v0  ;;  %v40_v6 = vld [vmem:[%s208_s0 + $0x8] sm:$0xff]  ;;  %v123_v13 = vld [vmem:[%s210_s2] ss:$0 sm:$0xff] }
   0xa   :  { %110 = vmatpush.xpose.msk.msra.mxu0 %vm34_vm0, %v43_v2  ;;  %116 = vmatpush.xpose.msk.msra.mxu1 %vm34_vm0, %v43_v2 }
   0xd   :  { %v37_v7 = vld [vmem:[#allocation2] sm:$0xff] }
   0xe   :  { %111 = vmatpush.xpose.msk.msra.mxu0 %vm34_vm0, %v42_v3  ;;  %117 = vmatpush.xpose.msk.msra.mxu1 %vm34_vm0, %v42_v3  ;;  %v38_v8 = vld [vmem:[#allocation2 + $0x8] sm:$0xff] }
  0x12   :  { %112 = vmatpush.xpose.msk.msra.mxu0 %vm34_vm0, %v41_v4  ;;  %118 = vmatpush.xpose.msk.msra.mxu1 %vm34_vm0, %v41_v4 }
  0x15   :  { %113 = vmatmul.msk.f32.vlgmr.msra.gmra.mxu0 %vm34_vm0, %v39_v5  ;;  %114 = vmatmul.msk.f32.vlgmr.msra.gmra.mxu1 %vm34_vm0, %v40_v6 }
  0x92   :  { %v81_v9 = vpop.f32.mrf.mxu0  ;;  %v84_v10 = vpop.f32.mrf.mxu1 }
  0x93   :  { %v87_v11 = vadd.f32 %v81_v9, %v37_v7  ;;  %v88_v12 = vadd.f32 %v84_v10, %v38_v8 }
  0x95   :  { %89 = vst.msk [vmem:[#allocation2] sm:$0xff] %vm34_vm0, %v87_v11 }
  0x96   :  { %90 = vst.msk [vmem:[#allocation2 + $0x8] sm:$0xff] %vm34_vm0, %v88_v12 }
  0x9c   :  { %v94_v14 = vld [vmem:[#allocation2] sm:$0xff] }
  0x9d   :  { %v100_v15 = vadd.f32 %v123_v13, %v94_v14  ;;  %v95_v16 = vld [vmem:[#allocation2 + $0x8] sm:$0xff] }
  0x9e   :  { %v101_v17 = vadd.f32 %v123_v13, %v95_v16 }
  0x9f   :  { %102 = vst.msk [vmem:[%s211_s3] sm:$0xff] %vm34_vm0, %v100_v15 }
  0xa0   :  { %103 = vst.msk [vmem:[%s211_s3 + $0x8] sm:$0xff] %vm34_vm0, %v101_v17 }
  0xa1   :  { %108 = vsyncpa [#allocation4], 1 }

// kernel: mha_rotary_forward.7
= control target key start
LH: loop header
LB: loop body
LE: loop exit
PB: predicated region body
PF: predicated region fallthrough
CT: control target
= control target key end

     0   :  { %vm18_vm0 = vcmask 261120   ;;  %v104_v1 = vmov 0.0   ;;  %s168_s1 = inlined_call_operand.vmem [shape: f32[32,32], index: 1, kind: input, shape index: {}]   ;;  %s169_s2 = inlined_call_operand.vmem [shape: f32[1,32], index: 2, kind: input, shape index: {}]   ;;  %s170_s0 = inlined_call_operand.vmem [shape: f32[16,32], index: 0, kind: input, shape index: {}]   ;;  %s171_s3 = inlined_call_operand.vmem [shape: f32[16,32], index: 3, kind: output, shape index: {}]  }
   0x1   :  { %v28_v0 = vld [vmem:[%s168_s1 + $0x18] sm:$0xff]  ;;  %19 = vst.msk [vmem:[#allocation2] sm:$0xff] %vm18_vm0, %v104_v1  ;;  %v27_v2 = vld [vmem:[%s168_s1 + $0x10] sm:$0xff]  ;;  %v26_v3 = vld [vmem:[%s168_s1 + $0x8] sm:$0xff] }
   0x2   :  { %92 = vmatpush.xpose.msk.msra.mxu0 %vm18_vm0, %v28_v0  ;;  %98 = vmatpush.xpose.msk.msra.mxu1 %vm18_vm0, %v28_v0  ;;  %20 = vst.msk [vmem:[#allocation2 + $0x8] sm:$0xff] %vm18_vm0, %v104_v1  ;;  %v25_v4 = vld [vmem:[%s168_s1] sm:$0xff]  ;;  %v24_v6 = vld [vmem:[%s170_s0 + $0x8] sm:$0xff] }
   0x3   :  { %v23_v5 = vld [vmem:[%s170_s0] sm:$0xff] }
   0x4   :  { %v103_v13 = vld [vmem:[%s169_s2] ss:$0 sm:$0xff] }
   0x6   :  { %93 = vmatpush.xpose.msk.msra.mxu0 %vm18_vm0, %v27_v2  ;;  %99 = vmatpush.xpose.msk.msra.mxu1 %vm18_vm0, %v27_v2 }
   0x8   :  { %v21_v7 = vld [vmem:[#allocation2] sm:$0xff] }
   0x9   :  { %v22_v8 = vld [vmem:[#allocation2 + $0x8] sm:$0xff] }
   0xa   :  { %94 = vmatpush.xpose.msk.msra.mxu0 %vm18_vm0, %v26_v3  ;;  %100 = vmatpush.xpose.msk.msra.mxu1 %vm18_vm0, %v26_v3 }
   0xe   :  { %95 = vmatpush.xpose.msk.msra.mxu0 %vm18_vm0, %v25_v4  ;;  %101 = vmatpush.xpose.msk.msra.mxu1 %vm18_vm0, %v25_v4 }
  0x11   :  { %96 = vmatmul.msk.f32.vlgmr.msra.gmra.mxu0 %vm18_vm0, %v23_v5  ;;  %97 = vmatmul.msk.f32.vlgmr.msra.gmra.mxu1 %vm18_vm0, %v24_v6 }
  0x8e   :  { %v65_v9 = vpop.f32.mrf.mxu0  ;;  %v68_v10 = vpop.f32.mrf.mxu1 }
  0x8f   :  { %v71_v11 = vadd.f32 %v65_v9, %v21_v7  ;;  %v72_v12 = vadd.f32 %v68_v10, %v22_v8 }
  0x91   :  { %73 = vst.msk [vmem:[#allocation2] sm:$0xff] %vm18_vm0, %v71_v11 }
  0x92   :  { %74 = vst.msk [vmem:[#allocation2 + $0x8] sm:$0xff] %vm18_vm0, %v72_v12 }
  0x98   :  { %v78_v14 = vld [vmem:[#allocation2] sm:$0xff] }
  0x99   :  { %v84_v15 = vadd.f32 %v103_v13, %v78_v14  ;;  %v79_v16 = vld [vmem:[#allocation2 + $0x8] sm:$0xff] }
  0x9a   :  { %v85_v17 = vadd.f32 %v103_v13, %v79_v16 }
  0x9b   :  { %86 = vst.msk [vmem:[%s171_s3] sm:$0xff] %vm18_vm0, %v84_v15 }
  0x9c   :  { %87 = vst.msk [vmem:[%s171_s3 + $0x8] sm:$0xff] %vm18_vm0, %v85_v17 }

// kernel: mha_rotary_forward.9
= control target key start
LH: loop header
LB: loop body
LE: loop exit
PB: predicated region body
PF: predicated region fallthrough
CT: control target
= control target key end

     0   :  { %vm19_vm0 = vcmask 261120   ;;  %v148_v1 = vmov 0.0   ;;  %s212_s0 = inlined_call_operand.vmem [shape: f32[16,32], index: 0, kind: input, shape index: {}]   ;;  %s213_s1 = inlined_call_operand.vmem [shape: f32[32,32], index: 1, kind: input, shape index: {}]   ;;  %s214_s2 = inlined_call_operand.vmem [shape: f32[1,32], index: 2, kind: input, shape index: {}]   ;;  %s215_s3 = inlined_call_operand.hbm [shape: f32[16,32], index: 3, kind: output, shape index: {}]  }
   0x1   :  { %v29_v0 = vld [vmem:[%s213_s1 + $0x18] sm:$0xff]  ;;  %20 = vst.msk [vmem:[#allocation2] sm:$0xff] %vm19_vm0, %v148_v1  ;;  %v28_v2 = vld [vmem:[%s213_s1 + $0x10] sm:$0xff] }
   0x2   :  { %107 = vmatpush.xpose.msk.msra.mxu0 %vm19_vm0, %v29_v0  ;;  %113 = vmatpush.xpose.msk.msra.mxu1 %vm19_vm0, %v29_v0  ;;  %21 = vst.msk [vmem:[#allocation2 + $0x8] sm:$0xff] %vm19_vm0, %v148_v1 }
   0x3   :  { %8 = vsyncpa [#allocation4], 0  ;;  %v27_v3 = vld [vmem:[%s213_s1 + $0x8] sm:$0xff]  ;;  %v26_v4 = vld [vmem:[%s213_s1] sm:$0xff]  ;;  %s149_s25 = smov [#allocation3]   ;;  %s95_s28 = sshll.u32 %s215_s3, 4  ;;  %s96_s28 = int_to_ptr.hbm [resolvable:$true] %s95_s28 }
   0x4   :  { %v24_v5 = vld [vmem:[%s212_s0] sm:$0xff]  ;;  %v25_v6 = vld [vmem:[%s212_s0 + $0x8] sm:$0xff]  ;;  %s93_s0 = sshll.u32 %s149_s25, 4  ;;  %s150_s29 = smov 128   ;;  %s94_s0 = int_to_ptr.vmem [resolvable:$true] %s93_s0 }
   0x5   :  { %v121_v13 = vld [vmem:[%s214_s2] ss:$0 sm:$0xff]  ;;  %s151_s30 = smov 8  }
   0x6   :  { %108 = vmatpush.xpose.msk.msra.mxu0 %vm19_vm0, %v28_v2  ;;  %114 = vmatpush.xpose.msk.msra.mxu1 %vm19_vm0, %v28_v2 }
   0x8   :  { %v22_v7 = vld [vmem:[#allocation2] sm:$0xff] }
   0x9   :  { %v23_v8 = vld [vmem:[#allocation2 + $0x8] sm:$0xff] }
   0xa   :  { %109 = vmatpush.xpose.msk.msra.mxu0 %vm19_vm0, %v27_v3  ;;  %115 = vmatpush.xpose.msk.msra.mxu1 %vm19_vm0, %v27_v3 }
   0xe   :  { %110 = vmatpush.xpose.msk.msra.mxu0 %vm19_vm0, %v26_v4  ;;  %116 = vmatpush.xpose.msk.msra.mxu1 %vm19_vm0, %v26_v4 }
  0x11   :  { %111 = vmatmul.msk.f32.vlgmr.msra.gmra.mxu0 %vm19_vm0, %v24_v5  ;;  %112 = vmatmul.msk.f32.vlgmr.msra.gmra.mxu1 %vm19_vm0, %v25_v6 }
  0x8e   :  { %v66_v9 = vpop.f32.mrf.mxu0  ;;  %v69_v10 = vpop.f32.mrf.mxu1 }
  0x8f   :  { %v72_v11 = vadd.f32 %v66_v9, %v22_v7  ;;  %v73_v12 = vadd.f32 %v69_v10, %v23_v8 }
  0x91   :  { %74 = vst.msk [vmem:[#allocation2] sm:$0xff] %vm19_vm0, %v72_v11 }
  0x92   :  { %75 = vst.msk [vmem:[#allocation2 + $0x8] sm:$0xff] %vm19_vm0, %v73_v12 }
  0x98   :  { %v79_v14 = vld [vmem:[#allocation2] sm:$0xff] }
  0x99   :  { %v80_v15 = vld [vmem:[#allocation2 + $0x8] sm:$0xff]  ;;  %v85_v16 = vadd.f32 %v121_v13, %v79_v14 }
  0x9a   :  { %v86_v17 = vadd.f32 %v121_v13, %v80_v15 }
  0x9b   :  { %87 = vst.msk [vmem:[#allocation3] sm:$0xff] %vm19_vm0, %v85_v16 }
  0x9c   :  { %88 = vst.msk [vmem:[#allocation3 + $0x8] sm:$0xff] %vm19_vm0, %v86_v17 }
  0x9d   :  { %101 = dma.vmem_to_hbm [thread:$0]  %s94_s0, 256, %s96_s28, [#allocation4], %s150_s29, %s150_s29, %s151_s30  }
  0x9e   :  { %146 = dma.done.wait [#allocation4], 256  }
  0x9f   :  { %147 = vsyncadd [#allocation4], 4294967040 }
  0xa0   :  { %106 = vsyncpa [#allocation4], 1 }

// kernel: mha_rotary_forward.8
= control target key start
LH: loop header
LB: loop body
LE: loop exit
PB: predicated region body
PF: predicated region fallthrough
CT: control target
= control target key end

     0   :  { %s1388_s18 = smov 0   ;;  %s2099_s0 = inlined_call_operand.vmem [shape: f32[2,8,4,8], index: 0, kind: input, shape index: {}]   ;;  %s2100_s1 = inlined_call_operand.vmem [shape: f32[2,8,4,8], index: 1, kind: input, shape index: {}]   ;;  %s2101_s2 = inlined_call_operand.vmem [shape: f32[2,8,4,8], index: 2, kind: input, shape index: {}]   ;;  %s2102_s3 = inlined_call_operand.vmem [shape: f32[8,1,2], index: 3, kind: input, shape index: {}]   ;;  %s2103_s4 = inlined_call_operand.vmem [shape: f32[8,1,2], index: 4, kind: input, shape index: {}]   ;;  %s2104_s5 = inlined_call_operand.vmem [shape: f32[2,8,4,8], index: 5, kind: output, shape index: {}]  }
   0x1 LB: > { %s1275_s19 = sadd.s32 4294967295, %s1354_s18   ;;  %p1279_p0 = scmp.ge.s32.totalorder %s1354_s18, 1  ;;  %s1354_s18 = sphi %s1388_s18, %s15_s18  }
   0x2   : > { %p207_p1 = scmp.lt.s32.totalorder %s1354_s18, 3 }
   0x4   : > { %p208_p2 = pnand %p1279_p0, %p207_p1 }
   0x5   : > { %s1356_s24 = smov (!%p208_p2), 2   ;;  %p245_p3 = scmp.lt.s32.totalorder (!%p208_p2), %s1275_s19, 1 }
   0x6   : > { %211 = sbr.rel (%p208_p2) target bundleno = 1204 (0x4b4), region = 40  ;;  %s1357_s12 = smov (!%p208_p2), 126  }
   0xb   : > { %v1316_v0 = vld [vmem:[%s2103_s4 + $0x1] ss:$0 sm:$0xff]  ;;  %v1317_v1 = vld [vmem:[%s2103_s4] ss:$0 sm:$0xff]  ;;  %v1318_v2 = vld [vmem:[%s2103_s4 + $0x2] ss:$0 sm:$0xff] }
   0xc   : > { %363 = vrot.lane.b32.xlu0 %v1316_v0, %s1356_s24  ;;  %361 = vrot.lane.b32.xlu1 %v1317_v1, %s1356_s24  ;;  %v1319_v3 = vld [vmem:[%s2103_s4 + $0x3] ss:$0 sm:$0xff]  ;;  %v1325_v4 = vld [vmem:[%s2103_s4 + $0x4] ss:$0 sm:$0xff]  ;;  %s2110_s19 = smov (!%p245_p3, %s1275_s19), 1  ;;  %vm513_vm0 = vcmask 15360  }
   0xd   : > { %369 = vrot.lane.b32.xlu2 %v1325_v4, %s1356_s24  ;;  %v1326_v5 = vld [vmem:[%s2103_s4 + $0x5] ss:$0 sm:$0xff]  ;;  %v1422_v6 = vld [vmem:[%s2103_s4 + $0x6] ss:$0 sm:$0xff]  ;;  %v1427_v7 = vld [vmem:[%s2103_s4 + $0x7] ss:$0 sm:$0xff] }
   0xe   : > { %v1437_v8 = vld [vmem:[%s2102_s3 + $0x1] ss:$0 sm:$0xff]  ;;  %v1442_v9 = vld [vmem:[%s2102_s3 + $0x2] ss:$0 sm:$0xff]  ;;  %s1444_s16 = sshll.u32 %s2110_s19, 5  ;;  %vm522_vm1 = vcmask 31744  }
   0xf   : > { %v1449_v10 = vld [vmem:[%s2102_s3] ss:$0 sm:$0xff]  ;;  %s1455_s23 = scalar_lea.vmem %s2100_s1, %s1444_s16  ;;  %v1469_v12 = vld [vmem:[%s2102_s3 + $0x3] ss:$0 sm:$0xff]  ;;  %v1474_v13 = vld [vmem:[%s2102_s3 + $0x4] ss:$0 sm:$0xff]  ;;  %s1481_s30 = scalar_lea.vmem %s2099_s0, %s1444_s16 }
  0x10   : > { %v1464_v11 = vld [vmem:[%s1455_s23 + $0x4] sm:$0xf]  ;;  %v1489_v15 = vld [vmem:[%s1455_s23 + $0x8] sm:$0xf]  ;;  %v1509_v21 = vld [vmem:[%s1481_s30] sm:$0xf]  ;;  %s1719_s14 = scalar_lea.vmem %s2101_s2, %s1444_s16  ;;  %s2012_s20 = scalar_lea.vmem %s2104_s5, %s1444_s16 }
  0x11   : > { %v596_v14 = vmul.f32 %v1316_v0, %v1464_v11  ;;  %v1492_v16 = vld [vmem:[%s1481_s30 + $0x4] sm:$0xf]  ;;  %v597_v18 = vmul.f32 %v1318_v2, %v1489_v15  ;;  %v1506_v20 = vld [vmem:[%s1481_s30 + $0x8] sm:$0xf]  ;;  %v1512_v22 = vld [vmem:[%s1455_s23 + $0xc] sm:$0xf]  ;;  %v465_v23 = vmul.f32 %v1317_v1, %v1509_v21 }
  0x12   : > { %v1497_v17 = vld [vmem:[%s2102_s3 + $0x5] ss:$0 sm:$0xff]  ;;  %v466_v19 = vmul.f32 %v1316_v0, %v1492_v16  ;;  %v467_v24 = vmul.f32 %v1318_v2, %v1506_v20  ;;  %v598_v25 = vmul.f32 %v1319_v3, %v1512_v22  ;;  %v1520_v26 = vld [vmem:[%s1455_s23 + $0x10] sm:$0xf]  ;;  %v1524_v27 = vld [vmem:[%s1455_s23] sm:$0xf] }
  0x13   : > { %v599_v28 = vmul.f32 %v1325_v4, %v1520_v26  ;;  %v595_v29 = vmul.f32 %v1317_v1, %v1524_v27  ;;  %v1531_v30 = vld [vmem:[%s2102_s3 + $0x6] ss:$0 sm:$0xff]  ;;  %v1536_v31 = vld [vmem:[%s1481_s30 + $0x10] sm:$0xf]  ;;  %v1541_v32 = vld [vmem:[%s1481_s30 + $0xc] sm:$0xf] }
  0x14   : > { %365 = vrot.lane.b32.xlu0 %v1318_v2, %s1356_s24  ;;  %367 = vrot.lane.b32.xlu1 %v1319_v3, %s1356_s24  ;;  %v469_v33 = vmul.f32 %v1325_v4, %v1536_v31  ;;  %v468_v34 = vmul.f32 %v1319_v3, %v1541_v32  ;;  %v1548_v35 = vld [vmem:[%s2102_s3 + $0x7] ss:$0 sm:$0xff]  ;;  %v1553_v36 = vld [vmem:[%s1455_s23 + $0x18] sm:$0xf]  ;;  %vm676_vm2 = vcmask 1041409   ;;  %vm679_vm3 = vcmask 1042434  }
  0x15   : > { %371 = vrot.lane.b32.xlu2 %v1326_v5, %s1356_s24  ;;  %v1558_v37 = vld [vmem:[%s1481_s30 + $0x14] sm:$0xf]  ;;  %v601_v39 = vmul.f32 %v1422_v6, %v1553_v36  ;;  %v1571_v42 = vld [vmem:[%s1481_s30 + $0x18] sm:$0xf]  ;;  %vm682_vm4 = vcmask 1043459   ;;  %vm685_vm5 = vcmask 1044484  }
  0x16   : > { %v1561_v38 = vld [vmem:[%s1455_s23 + $0x14] sm:$0xf]  ;;  %v470_v40 = vmul.f32 %v1326_v5, %v1558_v37  ;;  %v471_v43 = vmul.f32 %v1422_v6, %v1571_v42  ;;  %vm688_vm6 = vcmask 1045509   ;;  %vm691_vm7 = vcmask 1046534  }
  0x17   : > { %v600_v41 = vmul.f32 %v1326_v5, %v1561_v38  ;;  %vm694_vm8 = vcmask 1047559   ;;  %vm718_vm9 = vcmask 64512   ;;  %vm815_vm10 = vcmask 57344  }
  0x1c   : > { %373 = vrot.lane.b32.xlu0 %v1422_v6, %s1356_s24  ;;  %375 = vrot.lane.b32.xlu1 %v1427_v7, %s1356_s24 }
  0x1d   : > { %435 = vrot.lane.b32.xlu2 %v1437_v8, %s1356_s24 }
  0x24   : > { %437 = vrot.lane.b32.xlu0 %v1442_v9, %s1356_s24  ;;  %433 = vrot.lane.b32.xlu1 %v1449_v10, %s1356_s24 }
  0x25   : > { %439 = vrot.lane.b32.xlu2 %v1469_v12, %s1356_s24 }
  0x2c   : > { %441 = vrot.lane.b32.xlu0 %v1474_v13, %s1356_s24  ;;  %613 = vrot.lane.b32.xlu1 %v596_v14, %s1356_s24 }
  0x2d   : > { %443 = vrot.lane.b32.xlu2 %v1497_v17, %s1356_s24 }
  0x34   : > { %615 = vrot.lane.b32.xlu0 %v597_v18, %s1356_s24  ;;  %483 = vrot.lane.b32.xlu1 %v466_v19, %s1356_s24 }
  0x35   : > { %481 = vrot.lane.b32.xlu2 %v465_v23, %s1356_s24 }
  0x3c   : > { %485 = vrot.lane.b32.xlu0 %v467_v24, %s1356_s24  ;;  %617 = vrot.lane.b32.xlu1 %v598_v25, %s1356_s24 }
  0x3d   : > { %619 = vrot.lane.b32.xlu2 %v599_v28, %s1356_s24 }
  0x44   : > { %611 = vrot.lane.b32.xlu0 %v595_v29, %s1356_s24  ;;  %445 = vrot.lane.b32.xlu1 %v1531_v30, %s1356_s24 }
  0x45   : > { %489 = vrot.lane.b32.xlu2 %v469_v33, %s1356_s24 }
  0x4c   : > { %487 = vrot.lane.b32.xlu0 %v468_v34, %s1356_s24  ;;  %447 = vrot.lane.b32.xlu1 %v1548_v35, %s1356_s24 }
  0x4d   : > { %623 = vrot.lane.b32.xlu2 %v601_v39, %s1356_s24  ;;  %v1617_v39 = vld [vmem:[%s1481_s30 + $0x1c] sm:$0xf] }
  0x54   : > { %491 = vrot.lane.b32.xlu0 %v470_v40, %s1356_s24  ;;  %621 = vrot.lane.b32.xlu1 %v600_v41, %s1356_s24  ;;  %v1620_v40 = vld [vmem:[%s1455_s23 + $0x1c] sm:$0xf] }
  0x5c   : > { %493 = vrot.lane.b32.xlu1 %v471_v43, %s1356_s24 }
  0x67   : > { %v370_v44 = vpop.permute.xlu2 %369 }
  0x68   : > { %v389_v58 = vmul.f32 %v370_v44, %v1536_v31  ;;  %v543_v3 = vmul.f32 %v370_v44, %v1520_v26 }
  0x6f   : > { %v372_v45 = vpop.permute.xlu2 %371 }
  0x70   : > { %v544_v63 = vmul.f32 %v372_v45, %v1561_v38  ;;  %v390_v24 = vmul.f32 %v372_v45, %v1558_v37 }
  0x77   : > { %v436_v46 = vpop.permute.xlu2 %435 }
  0x78   : > { %v588_v14 = vmul.f32 %v436_v46, %v1464_v11  ;;  %v458_v43 = vmul.f32 %v436_v46, %v1492_v16 }
  0x7e   : > { %v364_v47 = vpop.permute.xlu0 %363  ;;  %v362_v50 = vpop.permute.xlu1 %361 }
  0x7f   : > { %v386_v48 = vmul.f32 %v364_v47, %v1492_v16  ;;  %v540_v49 = vmul.f32 %v364_v47, %v1464_v11  ;;  %v1580_v51 = vpop.permute.xlu2 %439  ;;  %v539_v60 = vmul.f32 %v362_v50, %v1524_v27  ;;  %v385_v2 = vmul.f32 %v362_v50, %v1509_v21 }
  0x80   : > { %v590_v46 = vmul.f32 %v1580_v51, %v1512_v22 }
  0x81   : > { %557 = vrot.lane.b32.xlu0 %v540_v49, %s1357_s12  ;;  %403 = vrot.lane.b32.xlu2 %v386_v48, %s1357_s12  ;;  %v602_v48 = vmul.f32 %v1427_v7, %v1620_v40 }
  0x86   : > { %v366_v52 = vpop.permute.xlu0 %365  ;;  %v368_v55 = vpop.permute.xlu1 %367 }
  0x87   : > { %v387_v53 = vmul.f32 %v366_v52, %v1506_v20  ;;  %v541_v54 = vmul.f32 %v366_v52, %v1489_v15  ;;  %v388_v56 = vmul.f32 %v368_v55, %v1541_v32  ;;  %v1588_v57 = vpop.permute.xlu2 %443  ;;  %v542_v61 = vmul.f32 %v368_v55, %v1512_v22 }
  0x89   : > { %405 = vrot.lane.b32.xlu1 %v387_v53, %s1357_s12  ;;  %559 = vrot.lane.b32.xlu2 %v541_v54, %s1357_s12  ;;  %v472_v54 = vmul.f32 %v1427_v7, %v1617_v39 }
  0x8a   : > { %407 = vrot.lane.b32.xlu0 %v388_v56, %s1357_s12 }
  0x8e   : > { %v374_v59 = vpop.permute.xlu0 %373  ;;  %v376_v62 = vpop.permute.xlu1 %375 }
  0x8f   : > { %v482_v1 = vpop.permute.xlu2 %481  ;;  %v545_v18 = vmul.f32 %v374_v59, %v1553_v36  ;;  %v391_v19 = vmul.f32 %v374_v59, %v1571_v42  ;;  %v392_v44 = vmul.f32 %v376_v62, %v1617_v39  ;;  %v546_v45 = vmul.f32 %v376_v62, %v1620_v40 }
  0x91   : > { %555 = vrot.lane.b32.xlu1 %v539_v60, %s1357_s12  ;;  %561 = vrot.lane.b32.xlu2 %v542_v61, %s1357_s12 }
  0x92   : > { %409 = vrot.lane.b32.xlu0 %v389_v58, %s1357_s12 }
  0x96   : > { %v438_v0 = vpop.permute.xlu0 %437  ;;  %v434_v4 = vpop.permute.xlu1 %433 }
  0x97   : > { %v457_v5 = vmul.f32 %v434_v4, %v1509_v21  ;;  %v620_v33 = vpop.permute.xlu2 %619  ;;  %v589_v41 = vmul.f32 %v438_v0, %v1489_v15  ;;  %v459_v53 = vmul.f32 %v438_v0, %v1506_v20 }
  0x99   : > { %563 = vrot.lane.b32.xlu1 %v543_v3, %s1357_s12  ;;  %401 = vrot.lane.b32.xlu2 %v385_v2, %s1357_s12  ;;  %v1603_v6 = vadd.f32 %v482_v1, %v457_v5  ;;  %v330_v3 = vmul.f32 %v1437_v8, %v1492_v16 }
  0x9a   : > { %565 = vrot.lane.b32.xlu0 %v544_v63, %s1357_s12 }
  0x9e   : > { %v442_v23 = vpop.permute.xlu0 %441  ;;  %v614_v28 = vpop.permute.xlu1 %613 }
  0x9f   : > { %v591_v25 = vmul.f32 %v442_v23, %v1520_v26  ;;  %v1610_v29 = vadd.f32 %v614_v28, %v588_v14  ;;  %v490_v60 = vpop.permute.xlu2 %489  ;;  %v534_v28 = vmul.f32 %v1469_v12, %v1512_v22 }
  0xa1   : > { %567 = vrot.lane.b32.xlu1 %v545_v18, %s1357_s12  ;;  %411 = vrot.lane.b32.xlu2 %v390_v24, %s1357_s12  ;;  %v1614_v34 = vadd.f32 %v620_v33, %v591_v25  ;;  %v533_v18 = vmul.f32 %v1442_v9, %v1489_v15  ;;  %v461_v24 = vmul.f32 %v442_v23, %v1536_v31 }
  0xa2   : > { %413 = vrot.lane.b32.xlu0 %v391_v19, %s1357_s12  ;;  %v592_v23 = vmul.f32 %v1588_v57, %v1561_v38 }
  0xa6   : > { %v616_v47 = vpop.permute.xlu0 %615  ;;  %v484_v50 = vpop.permute.xlu1 %483 }
  0xa7   : > { %v637_v49 = vadd.f32 %v616_v47, %v589_v41  ;;  %v506_v52 = vadd.f32 %v484_v50, %v458_v43  ;;  %v624_v61 = vpop.permute.xlu2 %623  ;;  %v460_v41 = vmul.f32 %v1580_v51, %v1541_v32 }
  0xa9   : > { %415 = vrot.lane.b32.xlu1 %v392_v44, %s1357_s12  ;;  %569 = vrot.lane.b32.xlu2 %v546_v45, %s1357_s12  ;;  %v587_v44 = vmul.f32 %v434_v4, %v1524_v27  ;;  %v462_v45 = vmul.f32 %v1588_v57, %v1558_v37 }
  0xaa   : > { %625 = vrot.lane.b32.xlu0 %v602_v48, %s1356_s24 }
  0xae   : > { %v486_v55 = vpop.permute.xlu0 %485  ;;  %v618_v58 = vpop.permute.xlu1 %617 }
  0xaf   : > { %v1637_v56 = vadd.f32 %v486_v55, %v459_v53  ;;  %v638_v59 = vadd.f32 %v618_v58, %v590_v46  ;;  %v329_v55 = vmul.f32 %v1449_v10, %v1509_v21 }
  0xb1   : > { %495 = vrot.lane.b32.xlu2 %v472_v54, %s1356_s24  ;;  %v532_v54 = vmul.f32 %v1437_v8, %v1464_v11 }
  0xb6   : > { %v446_v62 = vpop.permute.xlu1 %445  ;;  %v612_v63 = vpop.permute.xlu0 %611 }
  0xb7   : > { %v593_v47 = vmul.f32 %v446_v62, %v1553_v36  ;;  %v463_v50 = vmul.f32 %v446_v62, %v1571_v42 }
  0xbe   : > { %v1640_v2 = vpop.permute.xlu1 %447  ;;  %v488_v0 = vpop.permute.xlu0 %487 }
  0xbf   : > { %v1672_v58 = vadd.f32 %v488_v0, %v460_v41  ;;  %v1733_v41 = vmul.f32 %v1497_v17, %v1561_v38 }
  0xc6   : > { %v622_v14 = vpop.permute.xlu1 %621  ;;  %v492_v25 = vpop.permute.xlu0 %491 }
  0xc7   : > { %v1674_v57 = vadd.f32 %v492_v25, %v462_v45  ;;  %v1678_v62 = vadd.f32 %v622_v14, %v592_v23  ;;  %v1753_v23 = vld [vmem:[%s1719_s14 + $0x8] sm:$0xf] }
  0xce   : > { %v494_v53 = vpop.permute.xlu1 %493 }
  0xdb   : > { %v404_v1 = vpop.permute.xlu2 %403 }
  0xdc   : > { %v426_v7 = vsub.f32 %v330_v3, %v404_v1  ;;  %v1680_v1 = vadd.f32 %v494_v53, %v463_v50 }
  0xde   : > { %v515_v19 = vsel %vm513_vm0, %v426_v7, %v506_v52  ;;  %v1661_v52 = vadd.f32 %v490_v60, %v461_v24  ;;  %v1676_v60 = vadd.f32 %v624_v61, %v593_v47  ;;  %v331_v61 = vmul.f32 %v1442_v9, %v1506_v20  ;;  %v1747_v47 = vld [vmem:[%s1719_s14 + $0x4] sm:$0xf] }
  0xdf   : > { %v524_v48 = vsel %vm522_vm1, %v515_v19, %v1492_v16  ;;  %v1670_v16 = vadd.f32 %v612_v63, %v587_v44  ;;  %v1704_v19 = vmul.f32 %v1449_v10, %v1524_v27 }
  0xe0   : > { %v1663_v46 = vmul.f32 0.35355338, %v524_v48 }
  0xe2   : > { %v675_v7 = vrot.slane %v1663_v46, 7 }
  0xe3   : > { %v560_v5 = vpop.permute.xlu2 %559 }
  0xe4   : > { %v581_v43 = vsub.f32 %v533_v18, %v560_v5  ;;  %v334_v5 = vmul.f32 %v1497_v17, %v1558_v37 }
  0xe6   : > { %v645_v4 = vsel %vm513_vm0, %v581_v43, %v637_v49  ;;  %v1684_v49 = vmul.f32 %v1469_v12, %v1541_v32  ;;  %v949_v12 = vrot.slane %v1663_v46, 1  ;;  %v1737_v43 = vmul.f32 %v1474_v13, %v1520_v26 }
  0xe7   : > { %v1688_v8 = vsel %vm522_vm1, %v645_v4, %v1489_v15  ;;  %v1073_v15 = vrot.slane %v1663_v46, 2  ;;  %v1760_v4 = vld [vmem:[%s1719_s14] sm:$0xf] }
  0xe8   : > { %v706_v9 = vrot.slane %v1688_v8, 6 }
  0xeb   : > { %v562_v33 = vpop.permute.xlu2 %561 }
  0xec   : > { %v582_v51 = vsub.f32 %v534_v28, %v562_v33  ;;  %v1777_v33 = vld [vmem:[%s1719_s14 + $0x14] sm:$0xf] }
  0xee   : > { %v646_v63 = vsel %vm513_vm0, %v582_v51, %v638_v59  ;;  %v1700_v59 = vmul.f32 %v1474_v13, %v1536_v31  ;;  %v1757_v51 = vmul.f32 %v1531_v30, %v1553_v36 }
  0xef   : > { %v1709_v24 = vsel %vm522_vm1, %v646_v63, %v1512_v22  ;;  %v764_v63 = vrot.slane %v1753_v23, 6 }
  0xf0   : > { %v708_v44 = vrot.slane %v1709_v24, 5 }
  0xf3   : > { %v558_v0 = vpop.permute.xlu0 %557  ;;  %v402_v3 = vpop.permute.xlu2 %401 }
  0xf4   : > { %v580_v14 = vsub.f32 %v532_v54, %v558_v0  ;;  %v425_v18 = vsub.f32 %v329_v55, %v402_v3  ;;  %v1763_v54 = vld [vmem:[%s1719_s14 + $0xc] sm:$0xf]  ;;  %v762_v55 = vrot.slane %v1747_v47, 7 }
  0xf6   : > { %v644_v25 = vsel %vm513_vm0, %v580_v14, %v1610_v29  ;;  %v514_v28 = vsel %vm513_vm0, %v425_v18, %v1603_v6  ;;  %v763_v45 = vsel %vm676_vm2, %v762_v55, %v1760_v4 }
  0xf7   : > { %v1725_v22 = vsel %vm522_vm1, %v644_v25, %v1464_v11  ;;  %v523_v29 = vsel %vm522_vm1, %v514_v28, %v1509_v21  ;;  %v1744_v21 = vmul.f32 %v1531_v30, %v1571_v42  ;;  %v1770_v25 = vld [vmem:[%s1719_s14 + $0x10] sm:$0xf]  ;;  %v766_v30 = vrot.slane %v1763_v54, 5 }
  0xf8   : > { %v1729_v6 = vmul.f32 0.35355338, %v523_v29  ;;  %v704_v17 = vrot.slane %v1725_v22, 7 }
  0xfa   : > { %v824_v13 = vrot.slane %v1729_v6, 1  ;;  %v1072_v48 = vrot.slane %v1729_v6, 3  ;;  %v677_v0 = vsel %vm676_vm2, %v675_v7, %v1729_v6  ;;  %v768_v7 = vrot.slane %v1770_v25, 4 }
  0xfb   : > { %v406_v50 = vpop.permute.xlu1 %405  ;;  %v412_v53 = vpop.permute.xlu2 %411 }
  0xfc   : > { %v408_v3 = vpop.permute.xlu0 %407  ;;  %v427_v14 = vsub.f32 %v331_v61, %v406_v50  ;;  %v430_v18 = vsub.f32 %v334_v5, %v412_v53  ;;  %v825_v28 = vsel %vm676_vm2, %v1663_v46, %v824_v13  ;;  %v1074_v61 = vsel %vm676_vm2, %v1073_v15, %v1072_v48  ;;  %v1788_v53 = vld [vmem:[%s1719_s14 + $0x18] sm:$0xf]  ;;  %v1799_v48 = vld [vmem:[%s1719_s14 + $0x1c] sm:$0xf] }
  0xfd   : > { %v428_v29 = vsub.f32 %v1684_v49, %v408_v3  ;;  %v765_v13 = vsel %vm679_vm3, %v764_v63, %v763_v45  ;;  %v770_v49 = vrot.slane %v1777_v33, 3 }
  0xfe   : > { %v516_v5 = vsel %vm513_vm0, %v427_v14, %v1637_v56  ;;  %v519_v50 = vsel %vm513_vm0, %v430_v18, %v1674_v57  ;;  %v767_v56 = vsel %vm682_vm4, %v766_v30, %v765_v13 }
  0xff   : > { %v517_v3 = vsel %vm513_vm0, %v428_v29, %v1672_v58  ;;  %v525_v55 = vsel %vm522_vm1, %v516_v5, %v1506_v20  ;;  %v528_v15 = vsel %vm522_vm1, %v519_v50, %v1558_v37  ;;  %v769_v58 = vsel %vm685_vm5, %v768_v7, %v767_v56 }
 0x100   : > { %v526_v57 = vsel %vm522_vm1, %v517_v3, %v1541_v32  ;;  %v1804_v14 = vmul.f32 0.35355338, %v525_v55  ;;  %v1806_v45 = vmul.f32 0.35355338, %v528_v15  ;;  %v772_v20 = vrot.slane %v1788_v53, 2 }
 0x101   : > { %v1808_v63 = vmul.f32 0.35355338, %v526_v57  ;;  %v774_v37 = vrot.slane %v1799_v48, 1  ;;  %v771_v32 = vsel %vm688_vm6, %v770_v49, %v769_v58  ;;  %v963_v5 = vrot.slane %v1725_v22, 1 }
 0x102   : > { %v678_v18 = vrot.slane %v1804_v14, 6  ;;  %v826_v30 = vrot.slane %v1804_v14, 7  ;;  %v1075_v29 = vrot.slane %v1804_v14, 1  ;;  %v1087_v50 = vrot.slane %v1725_v22, 2 }
 0x103   : > { %v556_v13 = vpop.permute.xlu1 %555  ;;  %v773_v3 = vsel %vm691_vm7, %v772_v20, %v771_v32  ;;  %v681_v7 = vrot.slane %v1808_v63, 5  ;;  %v948_v55 = vrot.slane %v1729_v6, 2  ;;  %v952_v49 = vrot.slane %v1808_v63, 7 }
 0x104   : > { %v410_v15 = vpop.permute.xlu0 %409  ;;  %v579_v56 = vsub.f32 %v1704_v19, %v556_v13  ;;  %v775_v57 = vsel %vm694_vm8, %v774_v37, %v773_v3  ;;  %v680_v11 = vsel %vm679_vm3, %v678_v18, %v677_v0  ;;  %v827_v20 = vsel %vm679_vm3, %v826_v30, %v825_v28 }
 0x105   : > { %v429_v58 = vsub.f32 %v1700_v59, %v410_v15  ;;  %795 = vmatpush.msra.mxu1 %v775_v57  ;;  %v683_v10 = vsel %vm682_vm4, %v681_v7, %v680_v11  ;;  %v687_v6 = vrot.slane %v1806_v45, 3  ;;  %v828_v19 = vrot.slane %v1808_v63, 6 }
 0x106   : > { %v643_v32 = vsel %vm513_vm0, %v579_v56, %v1670_v16  ;;  %v1076_v37 = vsel %vm679_vm3, %v1075_v29, %v1074_v61  ;;  %v832_v18 = vrot.slane %v1806_v45, 4  ;;  %v2105_v56 = vrot.slane %v1688_v8, 7 }
 0x107   : > { %v518_v0 = vsel %vm513_vm0, %v429_v58, %v1661_v52  ;;  %v651_v59 = vsel %vm522_vm1, %v643_v32, %v1524_v27  ;;  %v1077_v11 = vsel %vm682_vm4, %v1808_v63, %v1076_v37  ;;  %v829_v52 = vsel %vm682_vm4, %v828_v19, %v827_v20 }
 0x108   : > { %v527_v16 = vsel %vm522_vm1, %v518_v0, %v1536_v31  ;;  %v705_v28 = vsel %vm676_vm2, %v704_v17, %v651_v59  ;;  %v838_v30 = vrot.slane %v651_v59, 1  ;;  %v962_v61 = vrot.slane %v651_v59, 2 }
 0x109   : > { %v663_v29 = vmul.f32 0.35355338, %v527_v16  ;;  %v1086_v13 = vrot.slane %v651_v59, 3  ;;  %v707_v27 = vsel %vm679_vm3, %v706_v9, %v705_v28  ;;  %v950_v17 = vsel %vm676_vm2, %v949_v12, %v948_v55 }
 0x10a   : > { %v709_v3 = vsel %vm682_vm4, %v708_v44, %v707_v27  ;;  %v839_v31 = vsel %vm676_vm2, %v1725_v22, %v838_v30  ;;  %v964_v7 = vsel %vm676_vm2, %v963_v5, %v962_v61  ;;  %v2106_v5 = vrot.slane %v1709_v24, 6 }
 0x10b   : > { %v564_v15 = vpop.permute.xlu1 %563  ;;  %v841_v9 = vsel %vm679_vm3, %v2105_v56, %v839_v31  ;;  %v965_v57 = vsel %vm679_vm3, %v1688_v8, %v964_v7  ;;  %v1088_v58 = vsel %vm676_vm2, %v1087_v50, %v1086_v13  ;;  %v684_v44 = vrot.slane %v663_v29, 4 }
 0x10c   : > { %v566_v20 = vpop.permute.xlu0 %565  ;;  %v583_v22 = vsub.f32 %v1737_v43, %v564_v15  ;;  %v843_v46 = vsel %vm682_vm4, %v2106_v5, %v841_v9  ;;  %v2107_v12 = vrot.slane %v1709_v24, 7  ;;  %v1080_v32 = vrot.slane %v1806_v45, 6  ;;  %v1878_v43 = vpop.permute.xlu2 %569 }
 0x10d   : > { %v584_v19 = vsub.f32 %v1733_v41, %v566_v20  ;;  %v2108_v37 = vrot.slane %v1688_v8, 1  ;;  %v686_v0 = vsel %vm685_vm5, %v684_v44, %v683_v10  ;;  %v830_v59 = vrot.slane %v663_v29, 5 }
 0x10e   : > { %v967_v55 = vsel %vm682_vm4, %v2107_v12, %v965_v57  ;;  %v647_v16 = vsel %vm513_vm0, %v583_v22, %v1614_v34  ;;  %v1885_v30 = vsel %vm688_vm6, %v687_v6, %v686_v0  ;;  %v1078_v61 = vrot.slane %v663_v29, 7 }
 0x10f   : > { %v1090_v50 = vsel %vm679_vm3, %v2108_v37, %v1088_v58  ;;  %v648_v8 = vsel %vm513_vm0, %v584_v19, %v1678_v62  ;;  %v655_v41 = vsel %vm522_vm1, %v647_v16, %v1520_v26  ;;  %v831_v10 = vsel %vm685_vm5, %v830_v59, %v829_v52 }
 0x110   : > { %v1091_v28 = vsel %vm682_vm4, %v1709_v24, %v1090_v50  ;;  %v951_v13 = vsel %vm679_vm3, %v1804_v14, %v950_v17  ;;  %v656_v34 = vsel %vm522_vm1, %v648_v8, %v1561_v38  ;;  %v710_v27 = vrot.slane %v655_v41, 4 }
 0x111   : > { %v844_v24 = vrot.slane %v655_v41, 5  ;;  %v968_v31 = vrot.slane %v655_v41, 6  ;;  %v1092_v6 = vrot.slane %v655_v41, 7  ;;  %v712_v7 = vrot.slane %v656_v34, 3 }
 0x112   : > { %v846_v15 = vrot.slane %v656_v34, 4  ;;  %v970_v56 = vrot.slane %v656_v34, 5  ;;  %v711_v62 = vsel %vm685_vm5, %v710_v27, %v709_v3  ;;  %v1094_v52 = vrot.slane %v656_v34, 6 }
 0x113   : > { %v845_v9 = vsel %vm685_vm5, %v844_v24, %v843_v46  ;;  %v969_v26 = vsel %vm685_vm5, %v968_v31, %v967_v55  ;;  %v568_v57 = vpop.permute.xlu1 %567  ;;  %v713_v14 = vsel %vm688_vm6, %v712_v7, %v711_v62  ;;  %v1093_v58 = vsel %vm685_vm5, %v1092_v6, %v1091_v28 }
 0x114   : > { %v847_v17 = vsel %vm688_vm6, %v846_v15, %v845_v9  ;;  %v971_v38 = vsel %vm688_vm6, %v970_v56, %v969_v26  ;;  %v414_v44 = vpop.permute.xlu0 %413  ;;  %v585_v20 = vsub.f32 %v1757_v51, %v568_v57  ;;  %v1095_v22 = vsel %vm688_vm6, %v1094_v52, %v1093_v58 }
 0x115   : > { %v833_v3 = vsel %vm688_vm6, %v832_v18, %v831_v10  ;;  %v1079_v5 = vsel %vm685_vm5, %v1078_v61, %v1077_v11  ;;  %v431_v46 = vsub.f32 %v1744_v21, %v414_v44  ;;  %v953_v55 = vsel %vm682_vm4, %v952_v49, %v951_v13 }
 0x116   : > { %v1909_v12 = vsel %vm688_vm6, %v1080_v32, %v1079_v5  ;;  %v954_v19 = vrot.slane %v663_v29, 6  ;;  %v649_v37 = vsel %vm513_vm0, %v585_v20, %v1676_v60  ;;  %v956_v21 = vrot.slane %v1806_v45, 5  ;;  %v496_v32 = vpop.permute.xlu2 %495 }
 0x117   : > { %v520_v51 = vsel %vm513_vm0, %v431_v46, %v1680_v1  ;;  %v657_v18 = vsel %vm522_vm1, %v649_v37, %v1553_v36  ;;  %v336_v49 = vmul.f32 %v1548_v35, %v1617_v39  ;;  %v464_v60 = vmul.f32 %v1640_v2, %v1617_v39 }
 0x118   : > { %v955_v11 = vsel %vm685_vm5, %v954_v19, %v953_v55  ;;  %v529_v63 = vsel %vm522_vm1, %v520_v51, %v1571_v42  ;;  %v538_v1 = vmul.f32 %v1548_v35, %v1620_v40  ;;  %v714_v50 = vrot.slane %v657_v18, 2 }
 0x119   : > { %v665_v29 = vmul.f32 0.35355338, %v529_v63  ;;  %v957_v36 = vsel %vm688_vm6, %v956_v21, %v955_v11  ;;  %v594_v45 = vmul.f32 %v1640_v2, %v1620_v40  ;;  %v512_v0 = vadd.f32 %v496_v32, %v464_v60 }
 0x11a   : > { %v848_v16 = vrot.slane %v657_v18, 3  ;;  %v972_v42 = vrot.slane %v657_v18, 4  ;;  %v1096_v8 = vrot.slane %v657_v18, 5  ;;  %v586_v13 = vsub.f32 %v538_v1, %v1878_v43 }
 0x11b   : > { %v416_v59 = vpop.permute.xlu1 %415  ;;  %v690_v41 = vrot.slane %v665_v29, 2  ;;  %v958_v10 = vrot.slane %v665_v29, 4  ;;  %v715_v27 = vsel %vm691_vm7, %v714_v50, %v713_v14  ;;  %v834_v24 = vrot.slane %v665_v29, 3 }
 0x11c   : > { %v626_v28 = vpop.permute.xlu0 %625  ;;  %v432_v61 = vsub.f32 %v336_v49, %v416_v59  ;;  %v849_v7 = vsel %vm691_vm7, %v848_v16, %v847_v17  ;;  %v973_v15 = vsel %vm691_vm7, %v972_v42, %v971_v38  ;;  %v1097_v62 = vsel %vm691_vm7, %v1096_v8, %v1095_v22 }
 0x11d   : > { %v642_v34 = vadd.f32 %v626_v28, %v594_v45  ;;  %v959_v2 = vsel %vm691_vm7, %v958_v10, %v957_v36  ;;  %v692_v9 = vsel %vm691_vm7, %v690_v41, %v1885_v30  ;;  %v1082_v46 = vrot.slane %v665_v29, 5 }
 0x11e   : > { %v521_v35 = vsel %vm513_vm0, %v432_v61, %v512_v0  ;;  %v887_v41 = vrot.slane %v1760_v4, 1  ;;  %v1135_v10 = vrot.slane %v1760_v4, 3 }
 0x11f   : > { %v650_v31 = vsel %vm513_vm0, %v586_v13, %v642_v34  ;;  %v530_v6 = vsel %vm522_vm1, %v521_v35, %v1617_v39  ;;  %v835_v39 = vsel %vm691_vm7, %v834_v24, %v833_v3  ;;  %v1083_v19 = vsel %vm691_vm7, %v1082_v46, %v1909_v12 }
 0x120   : > { %v658_v43 = vsel %vm522_vm1, %v650_v31, %v1620_v40  ;;  %v666_v56 = vmul.f32 0.35355338, %v530_v6  ;;  %v1136_v13 = vrot.slane %v1747_v47, 2  ;;  %v889_v34 = vrot.slane %v1753_v23, 7 }
 0x121   : > { %v716_v26 = vrot.slane %v658_v43, 1  ;;  %v850_v52 = vrot.slane %v658_v43, 2  ;;  %v974_v57 = vrot.slane %v658_v43, 3  ;;  %v1098_v14 = vrot.slane %v658_v43, 4 }
 0x122   : > { %v693_v58 = vrot.slane %v666_v56, 1  ;;  %v836_v44 = vrot.slane %v666_v56, 2  ;;  %v960_v17 = vrot.slane %v666_v56, 3  ;;  %v1084_v55 = vrot.slane %v666_v56, 4 }
 0x123   : > { %v717_v38 = vsel %vm694_vm8, %v716_v26, %v715_v27  ;;  %v851_v20 = vsel %vm694_vm8, %v850_v52, %v849_v7  ;;  %v975_v40 = vsel %vm694_vm8, %v974_v57, %v973_v15  ;;  %v1099_v22 = vsel %vm694_vm8, %v1098_v14, %v1097_v62 }
 0x124   : > { %1288 = vmatpush.xpose.msk.msra.mxu0 %vm718_vm9, %v717_v38  ;;  %1291 = vmatpush.xpose.msk.msra.mxu2 %vm718_vm9, %v851_v20  ;;  %v695_v30 = vsel %vm694_vm8, %v693_v58, %v692_v9  ;;  %v837_v5 = vsel %vm694_vm8, %v836_v44, %v835_v39  ;;  %v1959_v3 = vsel %vm694_vm8, %v960_v17, %v959_v2  ;;  %v1138_v35 = vrot.slane %v1753_v23, 1 }
 0x125   : > { %1294 = vmatpush.xpose.msk.msrb.mxu1 %vm718_vm9, %v975_v40  ;;  %v1085_v37 = vsel %vm694_vm8, %v1084_v55, %v1083_v19  ;;  %v888_v27 = vsel %vm676_vm2, %v1747_v47, %v887_v41  ;;  %v891_v24 = vrot.slane %v1763_v54, 6  ;;  %v893_v2 = vrot.slane %v1770_v25, 5 }
 0x126   : > { %v895_v31 = vrot.slane %v1777_v33, 4  ;;  %v890_v6 = vsel %vm679_vm3, %v889_v34, %v888_v27  ;;  %v897_v7 = vrot.slane %v1788_v53, 3  ;;  %v899_v15 = vrot.slane %v1799_v48, 2 }
 0x127   : > { %1289 = vmatmul.msk.f32.vlgmr.msra.gmra.mxu0 %vm718_vm9, %v695_v30  ;;  %1292 = vmatmul.msk.f32.vlgmr.msra.gmra.mxu2 %vm718_vm9, %v837_v5  ;;  %v1137_v43 = vsel %vm676_vm2, %v1136_v13, %v1135_v10  ;;  %v892_v56 = vsel %vm682_vm4, %v891_v24, %v890_v6  ;;  %v1141_v9 = vrot.slane %v1770_v25, 7  ;;  %v1143_v26 = vrot.slane %v1777_v33, 6 }
 0x128   : > { %1297 = vmatpush.xpose.msk.msrb.mxu0 %vm718_vm9, %v1099_v22  ;;  %v1139_v62 = vsel %vm679_vm3, %v1138_v35, %v1137_v43  ;;  %v894_v52 = vsel %vm685_vm5, %v893_v2, %v892_v56  ;;  %v1145_v14 = vrot.slane %v1788_v53, 5  ;;  %v1147_v58 = vrot.slane %v1799_v48, 4 }
 0x129   : > { %v1140_v57 = vsel %vm682_vm4, %v1763_v54, %v1139_v62  ;;  %v896_v39 = vsel %vm688_vm6, %v895_v31, %v894_v52  ;;  %v1011_v43 = vrot.slane %v1760_v4, 2  ;;  %v1012_v56 = vrot.slane %v1747_v47, 1 }
 0x12a   : > { %v1142_v44 = vsel %vm685_vm5, %v1141_v9, %v1140_v57  ;;  %v898_v17 = vsel %vm691_vm7, %v897_v7, %v896_v39  ;;  %v1015_v62 = vrot.slane %v1763_v54, 7  ;;  %v1017_v9 = vrot.slane %v1770_v25, 6 }
 0x12b   : > { %v1144_v38 = vsel %vm688_vm6, %v1143_v26, %v1142_v44  ;;  %v900_v20 = vsel %vm694_vm8, %v899_v15, %v898_v17  ;;  %v1013_v26 = vsel %vm676_vm2, %v1012_v56, %v1011_v43  ;;  %v1019_v52 = vrot.slane %v1777_v33, 5 }
 0x12c   : > { %v1146_v40 = vsel %vm691_vm7, %v1145_v14, %v1144_v38  ;;  %920 = vmatpush.msra.mxu3 %v900_v20  ;;  %v1014_v57 = vsel %vm679_vm3, %v1753_v23, %v1013_v26  ;;  %v1021_v14 = vrot.slane %v1788_v53, 4  ;;  %v1023_v4 = vrot.slane %v1799_v48, 3 }
 0x12d   : > { %v1148_v22 = vsel %vm694_vm8, %v1147_v58, %v1146_v40  ;;  %v1016_v58 = vsel %vm682_vm4, %v1015_v62, %v1014_v57 }
 0x12e   : > { %1168 = vmatpush.msrb.mxu2 %v1148_v22  ;;  %v1018_v47 = vsel %vm685_vm5, %v1017_v9, %v1016_v58 }
 0x12f   : > { %1298 = vmatmul.msk.f32.vlgmr.msrb.gmra.mxu0 %vm718_vm9, %v1085_v37  ;;  %v1020_v54 = vsel %vm688_vm6, %v1019_v52, %v1018_v47 }
 0x130   : > { %v1022_v25 = vsel %vm691_vm7, %v1021_v14, %v1020_v54 }
 0x131   : > { %v1024_v39 = vsel %vm694_vm8, %v1023_v4, %v1022_v25 }
 0x132   : > { %1044 = vmatpush.msrb.mxu3 %v1024_v39 }
 0x1a4   : > { %v740_v51 = vpop.f32.mrf.mxu0 }
 0x1a5   : > { %v743_v18 = vsel %vm718_vm9, %v740_v51, -inf }
 0x1a6   : > { %744 = vmax.xlane.f32.xlu0 %v743_v18 }
 0x1aa   : > { %v873_v11 = vpop.f32.mrf.mxu2 }
 0x1ab   : > { %v876_v21 = vsel %vm718_vm9, %v873_v11, -inf }
 0x1ac   : > { %877 = vmax.xlane.f32.xlu2 %v876_v21  ;;  %v1121_v32 = vpop.f32.mrf.mxu0 }
 0x1ad   : > { %v1124_v63 = vsel %vm718_vm9, %v1121_v32, -inf }
 0x1ae   : > { %1125 = vmax.xlane.f32.xlu0 %v1124_v63 }
 0x219   : > { %v745_v49 = vpop.xlane.xlu0 %744 }
 0x21a   : > { %v746_v60 = vsub.f32 %v740_v51, %v745_v49 }
 0x21c   : > { %v747_v1 = vmul.f32 1.442695, %v746_v60 }
 0x21e   : > { %1332 = vpow2.f32 %v747_v1 }
 0x21f   : > { %v878_v12 = vpop.xlane.xlu2 %877 }
 0x220   : > { %v879_v29 = vsub.f32 %v873_v11, %v878_v12 }
 0x221   : > { %v1126_v36 = vpop.xlane.xlu0 %1125 }
 0x222   : > { %v880_v50 = vmul.f32 1.442695, %v879_v29  ;;  %v1127_v45 = vsub.f32 %v1121_v32, %v1126_v36 }
 0x224   : > { %v1333_v0 = vpop.eup %1332  ;;  %1334 = vpow2.f32 %v880_v50  ;;  %v1128_v59 = vmul.f32 1.442695, %v1127_v45 }
 0x225   : > { %v749_v16 = vsel %vm718_vm9, %v1333_v0, 0.0 }
 0x226   : > { %1336 = vpow2.f32 %v1128_v59  ;;  %750 = vadd.xlane.f32.xlu1 %v749_v16 }
 0x22a   : > { %v1335_v42 = vpop.eup %1334 }
 0x22b   : > { %v882_v61 = vsel %vm718_vm9, %v1335_v42, 0.0 }
 0x22c   : > { %v1337_v28 = vpop.eup %1336 }
 0x22d   : > { %v1130_v8 = vsel %vm718_vm9, %v1337_v28, 0.0 }
 0x22e   : > { %883 = vadd.xlane.f32.xlu1 %v882_v61  ;;  %1131 = vadd.xlane.f32.xlu0 %v1130_v8 }
 0x299   : > { %v751_v30 = vpop.xlane.xlu1 %750 }
 0x29a   : > { %1338 = vrcp.f32 %v751_v30 }
 0x2a0   : > { %v1339_v5 = vpop.eup %1338 }
 0x2a1   : > { %v884_v46 = vpop.xlane.xlu1 %883  ;;  %v1132_v55 = vpop.xlane.xlu0 %1131  ;;  %v753_v19 = vmul.f32 %v1339_v5, %v1333_v0 }
 0x2a2   : > { %1340 = vrcp.f32 %v884_v46 }
 0x2a3   : > { %1342 = vrcp.f32 %v1132_v55  ;;  %1290 = vmatmul.msk.f32.vlgmr.msra.gmra.mxu1 %vm718_vm9, %v753_v19 }
 0x2a8   : > { %v1341_v37 = vpop.eup %1340 }
 0x2a9   : > { %v1343_v51 = vpop.eup %1342  ;;  %v886_v18 = vmul.f32 %v1341_v37, %v1335_v42 }
 0x2aa   : > { %v1134_v11 = vmul.f32 %v1343_v51, %v1337_v28 }
 0x2ab   : > { %1293 = vmatmul.msk.f32.vlgmr.msra.gmra.mxu3 %vm718_vm9, %v886_v18  ;;  %1295 = vmatmul.msk.f32.vlgmr.msrb.gmra.mxu1 %vm718_vm9, %v1959_v3 }
 0x2ac   : > { %1299 = vmatmul.msk.f32.vlgmr.msrb.gmra.mxu2 %vm718_vm9, %v1134_v11 }
 0x320   : > { %v797_v21 = vpop.f32.mrf.mxu1 }
 0x321   : > { %v801_v32 = vrot.slane %v797_v21, 1  ;;  %v802_v63 = vrot.slane %v797_v21, 2  ;;  %v803_v3 = vrot.slane %v797_v21, 3  ;;  %816 = vst.msk [vmem:[%s2012_s20] sm:$0x1] %vm815_vm10, %v797_v21  ;;  %v804_v49 = vrot.slane %v797_v21, 4 }
 0x322   : > { %v805_v60 = vrot.slane %v797_v21, 5  ;;  %v806_v1 = vrot.slane %v797_v21, 6  ;;  %v807_v12 = vrot.slane %v797_v21, 7 }
 0x323   : > { %817 = vst.msk [vmem:[%s2012_s20 + $0x4] sm:$0x1] %vm815_vm10, %v801_v32 }
 0x324   : > { %818 = vst.msk [vmem:[%s2012_s20 + $0x8] sm:$0x1] %vm815_vm10, %v802_v63 }
 0x325   : > { %819 = vst.msk [vmem:[%s2012_s20 + $0xc] sm:$0x1] %vm815_vm10, %v803_v3 }
 0x326   : > { %820 = vst.msk [vmem:[%s2012_s20 + $0x10] sm:$0x1] %vm815_vm10, %v804_v49 }
 0x327   : > { %821 = vst.msk [vmem:[%s2012_s20 + $0x14] sm:$0x1] %vm815_vm10, %v805_v60 }
 0x328   : > { %822 = vst.msk [vmem:[%s2012_s20 + $0x18] sm:$0x1] %vm815_vm10, %v806_v1  ;;  %v997_v29 = vpop.f32.mrf.mxu1 }
 0x329   : > { %823 = vst.msk [vmem:[%s2012_s20 + $0x1c] sm:$0x1] %vm815_vm10, %v807_v12  ;;  %v1000_v36 = vsel %vm718_vm9, %v997_v29, -inf }
 0x32a   : > { %1001 = vmax.xlane.f32.xlu2 %v1000_v36 }
 0x32e   : > { %v922_v50 = vpop.f32.mrf.mxu3 }
 0x32f   : > { %v926_v45 = vrot.slane %v922_v50, 1  ;;  %v927_v0 = vrot.slane %v922_v50, 2  ;;  %v928_v59 = vrot.slane %v922_v50, 3  ;;  %940 = vst.msk [vmem:[%s2012_s20 + $0x1] sm:$0x1] %vm815_vm10, %v922_v50  ;;  %v1170_v16 = vpop.f32.mrf.mxu2  ;;  %v929_v42 = vrot.slane %v922_v50, 4 }
 0x330   : > { %1188 = vst.msk [vmem:[%s2012_s20 + $0x3] sm:$0x1] %vm815_vm10, %v1170_v16  ;;  %v930_v28 = vrot.slane %v922_v50, 5  ;;  %v931_v61 = vrot.slane %v922_v50, 6  ;;  %v932_v8 = vrot.slane %v922_v50, 7  ;;  %v1174_v41 = vrot.slane %v1170_v16, 1 }
 0x331   : > { %941 = vst.msk [vmem:[%s2012_s20 + $0x5] sm:$0x1] %vm815_vm10, %v926_v45  ;;  %v1175_v10 = vrot.slane %v1170_v16, 2  ;;  %v1176_v13 = vrot.slane %v1170_v16, 3  ;;  %v1177_v34 = vrot.slane %v1170_v16, 4  ;;  %v1178_v35 = vrot.slane %v1170_v16, 5 }
 0x332   : > { %942 = vst.msk [vmem:[%s2012_s20 + $0x9] sm:$0x1] %vm815_vm10, %v927_v0  ;;  %v1179_v27 = vrot.slane %v1170_v16, 6  ;;  %v1180_v24 = vrot.slane %v1170_v16, 7 }
 0x333   : > { %943 = vst.msk [vmem:[%s2012_s20 + $0xd] sm:$0x1] %vm815_vm10, %v928_v59 }
 0x334   : > { %944 = vst.msk [vmem:[%s2012_s20 + $0x11] sm:$0x1] %vm815_vm10, %v929_v42 }
 0x335   : > { %945 = vst.msk [vmem:[%s2012_s20 + $0x15] sm:$0x1] %vm815_vm10, %v930_v28 }
 0x336   : > { %946 = vst.msk [vmem:[%s2012_s20 + $0x19] sm:$0x1] %vm815_vm10, %v931_v61 }
 0x337   : > { %947 = vst.msk [vmem:[%s2012_s20 + $0x1d] sm:$0x1] %vm815_vm10, %v932_v8 }
 0x338   : > { %1189 = vst.msk [vmem:[%s2012_s20 + $0x7] sm:$0x1] %vm815_vm10, %v1174_v41 }
 0x339   : > { %1190 = vst.msk [vmem:[%s2012_s20 + $0xb] sm:$0x1] %vm815_vm10, %v1175_v10 }
 0x33a   : > { %1191 = vst.msk [vmem:[%s2012_s20 + $0xf] sm:$0x1] %vm815_vm10, %v1176_v13 }
 0x33b   : > { %1192 = vst.msk [vmem:[%s2012_s20 + $0x13] sm:$0x1] %vm815_vm10, %v1177_v34 }
 0x33c   : > { %1193 = vst.msk [vmem:[%s2012_s20 + $0x17] sm:$0x1] %vm815_vm10, %v1178_v35 }
 0x33d   : > { %1194 = vst.msk [vmem:[%s2012_s20 + $0x1b] sm:$0x1] %vm815_vm10, %v1179_v27 }
 0x33e   : > { %1195 = vst.msk [vmem:[%s2012_s20 + $0x1f] sm:$0x1] %vm815_vm10, %v1180_v24 }
 0x39d   : > { %v1002_v2 = vpop.xlane.xlu2 %1001 }
 0x39e   : > { %v1003_v31 = vsub.f32 %v997_v29, %v1002_v2 }
 0x3a0   : > { %v1004_v6 = vmul.f32 1.442695, %v1003_v31 }
 0x3a2   : > { %1344 = vpow2.f32 %v1004_v6 }
 0x3a8   : > { %v1345_v7 = vpop.eup %1344 }
 0x3a9   : > { %v1006_v15 = vsel %vm718_vm9, %v1345_v7, 0.0 }
 0x3aa   : > { %1007 = vadd.xlane.f32.xlu2 %v1006_v15 }
 0x41d   : > { %v1008_v33 = vpop.xlane.xlu2 %1007 }
 0x41e   : > { %1346 = vrcp.f32 %v1008_v33 }
 0x424   : > { %v1347_v23 = vpop.eup %1346 }
 0x425   : > { %v1010_v53 = vmul.f32 %v1347_v23, %v1345_v7 }
 0x427   : > { %1296 = vmatmul.msk.f32.vlgmr.msrb.gmra.mxu3 %vm718_vm9, %v1010_v53 }
 0x4aa   : > { %v1046_v48 = vpop.f32.mrf.mxu3 }
 0x4ab   : > { %v1050_v44 = vrot.slane %v1046_v48, 1  ;;  %v1051_v17 = vrot.slane %v1046_v48, 2  ;;  %v1052_v38 = vrot.slane %v1046_v48, 3  ;;  %1064 = vst.msk [vmem:[%s2012_s20 + $0x2] sm:$0x1] %vm815_vm10, %v1046_v48  ;;  %v1053_v20 = vrot.slane %v1046_v48, 4 }
 0x4ac   : > { %v1054_v40 = vrot.slane %v1046_v48, 5  ;;  %v1055_v22 = vrot.slane %v1046_v48, 6  ;;  %v1056_v30 = vrot.slane %v1046_v48, 7 }
 0x4ad   : > { %1065 = vst.msk [vmem:[%s2012_s20 + $0x6] sm:$0x1] %vm815_vm10, %v1050_v44 }
 0x4ae   : > { %1066 = vst.msk [vmem:[%s2012_s20 + $0xa] sm:$0x1] %vm815_vm10, %v1051_v17 }
 0x4af   : > { %1067 = vst.msk [vmem:[%s2012_s20 + $0xe] sm:$0x1] %vm815_vm10, %v1052_v38 }
 0x4b0   : > { %1068 = vst.msk [vmem:[%s2012_s20 + $0x12] sm:$0x1] %vm815_vm10, %v1053_v20 }
 0x4b1   : > { %1069 = vst.msk [vmem:[%s2012_s20 + $0x16] sm:$0x1] %vm815_vm10, %v1054_v40 }
 0x4b2   : > { %1070 = vst.msk [vmem:[%s2012_s20 + $0x1a] sm:$0x1] %vm815_vm10, %v1055_v22 }
 0x4b3   : > { %1071 = vst.msk [vmem:[%s2012_s20 + $0x1e] sm:$0x1] %vm815_vm10, %v1056_v30 }
 0x4b4 PF: > { %s15_s18 = sadd.s32 1, %s1354_s18  }
 0x4b5   : > { %p12_p4 = scmp.ge.s32.totalorder %s15_s18, 4  }
 0x4b7   :  { %14 = sbr.rel (!%p12_p4) target bundleno = 1 (0x1), region = 76 }

</bundles_post_ra>
